<compile_context>
chip_gen: v7x
topology: tpu7x:2x2x1
jax: 0.10.0
libtpu: 0.0.40
codegen_flags: <defaults>
</compile_context>

<pallas_src>
import functools

import jax
import jax.numpy as jnp
from jax.experimental import pallas as pl
from jax.experimental.pallas import tpu as pltpu


# --------------------------------------------------------------------------
# helpers
# --------------------------------------------------------------------------

def _pad_to(x, mult, axis):
    pad = (-x.shape[axis]) % mult
    if pad == 0:
        return x
    widths = [(0, 0)] * x.ndim
    widths[axis] = (0, pad)
    return jnp.pad(x, widths)


def _pick_tm(m):
    """Row tile: prefer a divisor of M (no pad copy of the activation)."""
    if m <= 512:
        return m                       # block == full dim, always legal
    for tm in range(512, 255, -8):
        if m % tm == 0:
            return tm
    return 512                          # rare fallback: pad


def _pick_tk(k):
    """K tile: K itself when it fits, else the largest mult-of-128 divisor."""
    if k <= 1024:
        return k                        # single K step, no padding
    for tk in range(1024, 127, -128):
        if k % tk == 0:
            return tk
    return 512                          # rare fallback: pad


def _pick_tn(n, gi):
    tn = n if n <= 512 else 512         # cout is never padded
    if gi == 1 and n // tn == 1 and n >= 256:
        tn = n // 2                     # keep >=2 parallel blocks (v7x 2 TCs)
    return tn


def _row_tile(m, c):
    """~1 MiB bf16 block per step; prefer a divisor of M (no pad copies)."""
    target = max(8, min(8192, ((1 << 20) // (2 * c)) // 8 * 8))
    if m <= target:
        return m
    for tr in range(target, 7, -8):
        if m % tr == 0:
            return tr
    return target


# --------------------------------------------------------------------------
# matmul kernel (MXU): bf16 x bf16 -> f32 acc, bf16 out + fused BN statistics
# --------------------------------------------------------------------------

def _matmul_stats_kernel(a_ref, b_ref, o_ref, sum_ref, sq_ref, acc_ref):
    @pl.when(pl.program_id(2) == 0)
    def _():
        acc_ref[...] = jnp.zeros_like(acc_ref)

    acc_ref[...] += jnp.dot(a_ref[...], b_ref[...],
                            preferred_element_type=jnp.float32)

    # store once per (i, j) tile on the last K step; also emit the per-column
    # sum / sum-of-squares of this row-block (BN stats fused into the epilogue)
    @pl.when(pl.program_id(2) == pl.num_programs(2) - 1)
    def _():
        acc = acc_ref[...]
        o_ref[...] = acc.astype(o_ref.dtype)
        sum_ref[...] = jnp.sum(acc, axis=0)[None, None, :]
        sq_ref[...] = jnp.sum(acc * acc, axis=0)[None, None, :]


@functools.partial(jax.jit, static_argnames=("tm", "tn", "tk"))
def _matmul_call(a, b, *, tm, tn, tk):
    M, K = a.shape
    N = b.shape[1]
    a = _pad_to(_pad_to(a, tm, 0), tk, 1)     # usually a no-op (divisor tiles)
    b = _pad_to(b, tk, 0)                     # weights only; N never padded
    Mp, Kp = a.shape
    gi, gj, gk = Mp // tm, N // tn, Kp // tk
    out, sums3, sqs3 = pl.pallas_call(
        _matmul_stats_kernel,
        out_shape=(jax.ShapeDtypeStruct((Mp, N), jnp.bfloat16),
                   jax.ShapeDtypeStruct((gi, 1, N), jnp.float32),
                   jax.ShapeDtypeStruct((gi, 1, N), jnp.float32)),
        grid_spec=pltpu.PrefetchScalarGridSpec(
            num_scalar_prefetch=0,
            grid=(gi, gj, gk),
            in_specs=[pl.BlockSpec((tm, tk), lambda i, j, k: (i, k)),
                      pl.BlockSpec((tk, tn), lambda i, j, k: (k, j))],
            out_specs=(pl.BlockSpec((tm, tn), lambda i, j, k: (i, j)),
                       pl.BlockSpec((1, 1, tn), lambda i, j, k: (i, 0, j)),
                       pl.BlockSpec((1, 1, tn), lambda i, j, k: (i, 0, j))),
            scratch_shapes=[pltpu.VMEM((tm, tn), jnp.float32)]),
        compiler_params=pltpu.CompilerParams(
            dimension_semantics=("parallel", "parallel", "arbitrary")),
        cost_estimate=pl.CostEstimate(
            flops=2 * M * N * K,
            transcendentals=0,
            bytes_accessed=(M * K * 2) * gj + (K * N * 2) * gi
                           + M * N * 2 + gi * N * 8),
    )(a, b)
    col_sums = jnp.sum(sums3, axis=0)         # (1, N) - tiny reduce in XLA
    col_sqs = jnp.sum(sqs3, axis=0)
    if Mp != M:
        out = out[:M]
    return out, col_sums, col_sqs


def pallas_matmul(a, b):
    """(M,K) @ (K,N) -> (bf16 out, per-column sum, per-column sum-of-squares)."""
    M, K = a.shape
    N = b.shape[1]
    tm = _pick_tm(M)
    tk = _pick_tk(K)
    gi = pl.cdiv(M, tm)
    tn = _pick_tn(N, gi)
    return _matmul_call(a.astype(jnp.bfloat16), b.astype(jnp.bfloat16),
                        tm=tm, tn=tn, tk=tk)


# --------------------------------------------------------------------------
# BatchNorm apply (training-mode batch stats come fused from the matmul)
# --------------------------------------------------------------------------

def _bn_apply_kernel(x_ref, scale_ref, shift_ref, o_ref, *, relu):
    y = x_ref[...].astype(jnp.float32) * scale_ref[...] + shift_ref[...]
    if relu:
        y = jnp.maximum(y, 0.0)
    o_ref[...] = y.astype(o_ref.dtype)


def _bn_apply_add_relu_kernel(x_ref, r_ref, scale_ref, shift_ref, o_ref):
    y = (x_ref[...].astype(jnp.float32) * scale_ref[...] + shift_ref[...]
         + r_ref[...].astype(jnp.float32))
    o_ref[...] = jnp.maximum(y, 0.0).astype(o_ref.dtype)


def _bn_scale_shift(sums, sqs, gamma, beta, m, c):
    mean = sums / m
    var = jnp.maximum(sqs / m - mean * mean, 0.0)   # biased batch variance
    scale = gamma.reshape(1, c) * jax.lax.rsqrt(var + 1e-5)
    shift = beta.reshape(1, c) - mean * scale
    return scale, shift


@functools.partial(jax.jit, static_argnames=("relu",))
def _bn_apply_call(x2, sums, sqs, gamma, beta, *, relu):
    M, C = x2.shape
    scale, shift = _bn_scale_shift(sums, sqs, gamma, beta, M, C)
    tr = _row_tile(M, C)
    xp = _pad_to(x2, tr, 0)
    Mp = xp.shape[0]
    y = pl.pallas_call(
        functools.partial(_bn_apply_kernel, relu=relu),
        out_shape=jax.ShapeDtypeStruct((Mp, C), jnp.bfloat16),
        grid_spec=pltpu.PrefetchScalarGridSpec(
            num_scalar_prefetch=0,
            grid=(Mp // tr,),
            in_specs=[pl.BlockSpec((tr, C), lambda i: (i, 0)),
                      pl.BlockSpec((1, C), lambda i: (0, 0)),
                      pl.BlockSpec((1, C), lambda i: (0, 0))],
            out_specs=pl.BlockSpec((tr, C), lambda i: (i, 0))),
        compiler_params=pltpu.CompilerParams(
            dimension_semantics=("parallel",)),
    )(xp, scale, shift)
    return y[:M] if Mp != M else y


@jax.jit
def _bn_apply_res_call(x2, res2, sums, sqs, gamma, beta):
    M, C = x2.shape
    scale, shift = _bn_scale_shift(sums, sqs, gamma, beta, M, C)
    tr = _row_tile(M, C)
    xp = _pad_to(x2, tr, 0)
    rp = _pad_to(res2, tr, 0)
    Mp = xp.shape[0]
    y = pl.pallas_call(
        _bn_apply_add_relu_kernel,
        out_shape=jax.ShapeDtypeStruct((Mp, C), jnp.bfloat16),
        grid_spec=pltpu.PrefetchScalarGridSpec(
            num_scalar_prefetch=0,
            grid=(Mp // tr,),
            in_specs=[pl.BlockSpec((tr, C), lambda i: (i, 0)),
                      pl.BlockSpec((tr, C), lambda i: (i, 0)),
                      pl.BlockSpec((1, C), lambda i: (0, 0)),
                      pl.BlockSpec((1, C), lambda i: (0, 0))],
            out_specs=pl.BlockSpec((tr, C), lambda i: (i, 0))),
        compiler_params=pltpu.CompilerParams(
            dimension_semantics=("parallel",)),
    )(xp, rp, scale, shift)
    return y[:M] if Mp != M else y


def batchnorm(y, sums, sqs, gamma, beta, relu=False, residual=None):
    n, h, w, c = y.shape
    m = n * h * w
    y2 = y.reshape(m, c)
    if residual is None:
        o2 = _bn_apply_call(y2, sums, sqs, gamma, beta, relu=relu)
    else:
        o2 = _bn_apply_res_call(y2, residual.reshape(m, c), sums, sqs,
                                gamma, beta)
    return o2.reshape(n, h, w, c)


# --------------------------------------------------------------------------
# global average pool (tiled over batch)
# --------------------------------------------------------------------------

def _avgpool_kernel(x_ref, o_ref):
    o_ref[...] = jnp.mean(x_ref[...].astype(jnp.float32), axis=1,
                          keepdims=True)


@jax.jit
def pallas_global_avgpool(x3):
    # x3: (N, H*W, C) bf16 -> (N, C) f32
    n, hw, c = x3.shape
    y = pl.pallas_call(
        _avgpool_kernel,
        out_shape=jax.ShapeDtypeStruct((n, 1, c), jnp.float32),
        grid_spec=pltpu.PrefetchScalarGridSpec(
            num_scalar_prefetch=0,
            grid=(n,),
            in_specs=[pl.BlockSpec((1, hw, c), lambda i: (i, 0, 0))],
            out_specs=pl.BlockSpec((1, 1, c), lambda i: (i, 0, 0))),
        compiler_params=pltpu.CompilerParams(
            dimension_semantics=("parallel",)),
    )(x3)
    return y.reshape(n, c)


# --------------------------------------------------------------------------
# convolutions (im2col only for k>1; 1x1 convs are plain matmuls) & maxpool
# --------------------------------------------------------------------------

def _im2col(x, kh, kw, stride, pad):
    x = x.astype(jnp.bfloat16)           # no-op: activations are already bf16
    n, h, w, c = x.shape
    ho = (h + 2 * pad - kh) // stride + 1
    wo = (w + 2 * pad - kw) // stride + 1
    xp = jnp.pad(x, ((0, 0), (pad, pad), (pad, pad), (0, 0)))
    cols = []
    for i in range(kh):
        for j in range(kw):
            cols.append(xp[:, i:i + stride * ho:stride,
                           j:j + stride * wo:stride, :])
    patches = jnp.concatenate(cols, axis=-1)        # (n, ho, wo, kh*kw*c)
    return patches.reshape(n * ho * wo, kh * kw * c), n, ho, wo


@functools.partial(jax.jit, static_argnums=(2, 3))
def conv2d(x, w4, stride, pad):
    # x: NHWC bf16; w4: (kh, kw, Cin, Cout) bf16
    # returns (y NHWC bf16, per-channel sum (1,Cout), per-channel sumsq (1,Cout))
    kh, kw, cin, cout = w4.shape
    wmat = w4.reshape(kh * kw * cin, cout)
    if kh == 1 and kw == 1 and pad == 0:
        if stride != 1:
            x = x[:, ::stride, ::stride, :]
        n, h, wd, c = x.shape
        y, s, q = pallas_matmul(x.reshape(n * h * wd, c), wmat)
        return y.reshape(n, h, wd, cout), s, q
    a, n, ho, wo = _im2col(x, kh, kw, stride, pad)
    y, s, q = pallas_matmul(a, wmat)
    return y.reshape(n, ho, wo, cout), s, q


@jax.jit
def maxpool_3x3_s2_p1(x):
    # 3x3 / stride-2 / pad-1 max pool as a jit-fused running max over the 9
    # shifted views: one read + one write of the (bf16) tensor.
    n, h, w, c = x.shape
    ho = (h + 2 - 3) // 2 + 1
    wo = (w + 2 - 3) // 2 + 1
    xp = jnp.pad(x, ((0, 0), (1, 1), (1, 1), (0, 0)),
                 constant_values=float("-inf"))
    out = None
    for i in range(3):
        for j in range(3):
            tap = xp[:, i:i + 2 * ho:2, j:j + 2 * wo:2, :]
            out = tap if out is None else jnp.maximum(out, tap)
    return out


# --------------------------------------------------------------------------
# ResNet50 backbone (children[:9]) parameters & forward
# --------------------------------------------------------------------------

_LAYER_CFG = [(64, 3, 1), (128, 4, 2), (256, 6, 2), (512, 3, 2)]


def make_params(seed=42):
    base = jax.random.PRNGKey(seed)
    counter = [0]

    def _next_key():
        counter[0] += 1
        return jax.random.fold_in(base, counter[0])

    def conv_w(kh, kw, cin, cout):
        fan_in = kh * kw * cin
        w = (jax.random.normal(_next_key(), (kh, kw, cin, cout), jnp.float32)
             * (2.0 / fan_in) ** 0.5)
        return w.astype(jnp.bfloat16)          # weights stored bf16

    def bn_p(c):
        gamma = 1.0 + 0.1 * jax.random.normal(_next_key(), (c,), jnp.float32)
        beta = 0.1 * jax.random.normal(_next_key(), (c,), jnp.float32)
        return gamma, beta

    def bottleneck(inplanes, planes, stride, downsample):
        p = {
            "conv1": conv_w(1, 1, inplanes, planes), "bn1": bn_p(planes),
            "conv2": conv_w(3, 3, planes, planes), "bn2": bn_p(planes),
            "conv3": conv_w(1, 1, planes, planes * 4), "bn3": bn_p(planes * 4),
            "stride": stride,
        }
        if downsample:
            p["ds_conv"] = conv_w(1, 1, inplanes, planes * 4)
            p["ds_bn"] = bn_p(planes * 4)
        return p

    params = {"conv1": conv_w(7, 7, 3, 64), "bn1": bn_p(64)}
    inplanes = 64
    for li, (planes, nblocks, stride) in enumerate(_LAYER_CFG, start=1):
        blocks = []
        for b in range(nblocks):
            s = stride if b == 0 else 1
            ds = (b == 0) and (s != 1 or inplanes != planes * 4)
            blocks.append(bottleneck(inplanes, planes, s, ds))
            inplanes = planes * 4
        params[f"layer{li}"] = blocks
    return params


def bottleneck_forward(x, p):
    y, s, q = conv2d(x, p["conv1"], 1, 0)
    out = batchnorm(y, s, q, *p["bn1"], relu=True)
    y, s, q = conv2d(out, p["conv2"], p["stride"], 1)
    out = batchnorm(y, s, q, *p["bn2"], relu=True)
    y, s, q = conv2d(out, p["conv3"], 1, 0)
    if "ds_conv" in p:
        iy, isum, isq = conv2d(x, p["ds_conv"], p["stride"], 0)
        identity = batchnorm(iy, isum, isq, *p["ds_bn"], relu=False)
    else:
        identity = x
    # bn3 + residual add + final ReLU fused into one tiled kernel
    return batchnorm(y, s, q, *p["bn3"], relu=True, residual=identity)


def backbone_resnet50_forward(x_nchw, params):
    # NCHW (PyTorch) -> NHWC bf16 (kernel layout); activations stay bf16
    x = jnp.transpose(x_nchw, (0, 2, 3, 1)).astype(jnp.bfloat16)
    y, s, q = conv2d(x, params["conv1"], 2, 3)          # 7x7 / s2 / p3
    x = batchnorm(y, s, q, *params["bn1"], relu=True)
    x = maxpool_3x3_s2_p1(x)
    for li in range(1, 5):
        for blk in params[f"layer{li}"]:
            x = bottleneck_forward(x, blk)
    n, h, w, c = x.shape
    pooled = pallas_global_avgpool(x.reshape(n, h * w, c))   # (N, 2048) f32
    # AdaptiveAvgPool2d((1,1)) output in NCHW: (N, 2048, 1, 1)
    return pooled.reshape(n, c, 1, 1)


# --------------------------------------------------------------------------

if __name__ == "__main__":
    key = jax.random.PRNGKey(0)
    # small but valid: batch=2, 3 input channels, 32x32 spatial
    x = jax.random.normal(key, (2, 3, 32, 32), jnp.float32)

    params = make_params(seed=42)
    out = backbone_resnet50_forward(x, params)
    out = jax.block_until_ready(out)

    assert out.shape == (2, 2048, 1, 1), out.shape
    assert out.dtype == jnp.float32
    assert bool(jnp.all(jnp.isfinite(out)))
    print("KERNEL_OK")
</pallas_src>

<mosaic_0001>
module attributes {stable_mosaic.version = 11 : i64} {
  func.func @_matmul_stats_kernel(%arg0: i32, %arg1: i32, %arg2: i32, %arg3: memref<512x147xbf16, #tpu.memory_space<vmem>>, %arg4: memref<147x64xbf16, #tpu.memory_space<vmem>>, %arg5: memref<512x64xbf16, #tpu.memory_space<vmem>>, %arg6: memref<1x1x64xf32, #tpu.memory_space<vmem>>, %arg7: memref<1x1x64xf32, #tpu.memory_space<vmem>>, %arg8: memref<512x64xf32, #tpu.memory_space<vmem>>) attributes {dimension_semantics = [#tpu.dimension_semantics<parallel>, #tpu.dimension_semantics<parallel>, #tpu.dimension_semantics<arbitrary>], iteration_bounds = array<i64: 1, 1, 1>, scalar_prefetch = 0 : i64, scratch_operands = 1 : i64, tpu.core_type = #tpu.core_type<tc>, window_params = [{transform_indices = @transform_0, window_bounds = array<i64: 512, 147>}, {transform_indices = @transform_1, window_bounds = array<i64: 147, 64>}, {transform_indices = @transform_2, window_bounds = array<i64: 512, 64>}, {transform_indices = @transform_3, window_bounds = array<i64: 1, 1, 64>}, {transform_indices = @transform_4, window_bounds = array<i64: 1, 1, 64>}]} {
    %c0_i32 = arith.constant 0 : i32
    %0 = arith.cmpi eq, %arg2, %c0_i32 : i32
    %1 = arith.extui %0 : i1 to i32
    %c0_i32_0 = arith.constant 0 : i32
    %2 = arith.cmpi ne, %1, %c0_i32_0 : i32
    scf.if %2 {
      %cst_10 = arith.constant 0.000000e+00 : f32
      %12 = vector.broadcast %cst_10 : f32 to vector<512x64xf32>
      %c0_11 = arith.constant 0 : index
      %c0_12 = arith.constant 0 : index
      %13 = vector.load %arg8[%c0_11, %c0_12] : memref<512x64xf32, #tpu.memory_space<vmem>>, vector<512x64xf32>
      tpu.vector_store %arg8[%c0_11, %c0_12], %12 {strides = array<i32>} : memref<512x64xf32, #tpu.memory_space<vmem>>, vector<512x64xf32>,
    } else {
    }
    %c0 = arith.constant 0 : index
    %c0_1 = arith.constant 0 : index
    %3 = vector.load %arg8[%c0, %c0_1] : memref<512x64xf32, #tpu.memory_space<vmem>>, vector<512x64xf32>
    %c0_2 = arith.constant 0 : index
    %c0_3 = arith.constant 0 : index
    %4 = vector.load %arg3[%c0_2, %c0_3] : memref<512x147xbf16, #tpu.memory_space<vmem>>, vector<512x147xbf16>
    %c0_4 = arith.constant 0 : index
    %c0_5 = arith.constant 0 : index
    %5 = vector.load %arg4[%c0_4, %c0_5] : memref<147x64xbf16, #tpu.memory_space<vmem>>, vector<147x64xbf16>
    %cst = arith.constant dense<0.000000e+00> : vector<512x64xf32>
    %6 = tpu.matmul %4, %5, %cst {dimension_numbers = #tpu.dot_dimension_numbers<[1], [0], [0], [1], [0, 0, 1, 1], [], []>} : vector<512x147xbf16>, vector<147x64xbf16>, vector<512x64xf32> -> vector<512x64xf32>
    %7 = arith.addf %3, %6 : vector<512x64xf32>
    %c0_6 = arith.constant 0 : index
    %c0_7 = arith.constant 0 : index
    %8 = vector.load %arg8[%c0_6, %c0_7] : memref<512x64xf32, #tpu.memory_space<vmem>>, vector<512x64xf32>
    tpu.vector_store %arg8[%c0_6, %c0_7], %7 {strides = array<i32>} : memref<512x64xf32, #tpu.memory_space<vmem>>, vector<512x64xf32>,
    %c0_i32_8 = arith.constant 0 : i32
    %9 = arith.cmpi eq, %arg2, %c0_i32_8 : i32
    %10 = arith.extui %9 : i1 to i32
    %c0_i32_9 = arith.constant 0 : i32
    %11 = arith.cmpi ne, %10, %c0_i32_9 : i32
    scf.if %11 {
      %c0_10 = arith.constant 0 : index
      %c0_11 = arith.constant 0 : index
      %12 = vector.load %arg8[%c0_10, %c0_11] : memref<512x64xf32, #tpu.memory_space<vmem>>, vector<512x64xf32>
      %13 = arith.truncf %12 : vector<512x64xf32> to vector<512x64xbf16>
      %c0_12 = arith.constant 0 : index
      %c0_13 = arith.constant 0 : index
      %14 = vector.load %arg5[%c0_12, %c0_13] : memref<512x64xbf16, #tpu.memory_space<vmem>>, vector<512x64xbf16>
      tpu.vector_store %arg5[%c0_12, %c0_13], %13 {strides = array<i32>} : memref<512x64xbf16, #tpu.memory_space<vmem>>, vector<512x64xbf16>,
      %cst_14 = arith.constant dense<0.000000e+00> : vector<64xf32>
      %15 = vector.multi_reduction <add>, %12, %cst_14 [0] : vector<512x64xf32> to vector<64xf32>
      %16 = vector.shape_cast %15 : vector<64xf32> to vector<1x1x64xf32>
      %c0_15 = arith.constant 0 : index
      %c0_16 = arith.constant 0 : index
      %c0_17 = arith.constant 0 : index
      %17 = vector.load %arg6[%c0_15, %c0_16, %c0_17] : memref<1x1x64xf32, #tpu.memory_space<vmem>>, vector<1x1x64xf32>
      tpu.vector_store %arg6[%c0_15, %c0_16, %c0_17], %16 {strides = array<i32>} : memref<1x1x64xf32, #tpu.memory_space<vmem>>, vector<1x1x64xf32>,
      %18 = arith.mulf %12, %12 : vector<512x64xf32>
      %cst_18 = arith.constant dense<0.000000e+00> : vector<64xf32>
      %19 = vector.multi_reduction <add>, %18, %cst_18 [0] : vector<512x64xf32> to vector<64xf32>
      %20 = vector.shape_cast %19 : vector<64xf32> to vector<1x1x64xf32>
      %c0_19 = arith.constant 0 : index
      %c0_20 = arith.constant 0 : index
      %c0_21 = arith.constant 0 : index
      %21 = vector.load %arg7[%c0_19, %c0_20, %c0_21] : memref<1x1x64xf32, #tpu.memory_space<vmem>>, vector<1x1x64xf32>
      tpu.vector_store %arg7[%c0_19, %c0_20, %c0_21], %20 {strides = array<i32>} : memref<1x1x64xf32, #tpu.memory_space<vmem>>, vector<1x1x64xf32>,
    } else {
    }
    return
  }
  func.func @transform_0(%arg0: i32, %arg1: i32, %arg2: i32) -> (i32, i32) {
    %c0_i32 = arith.constant 0 : i32
    return %arg0, %arg2 : i32, i32
  }
  func.func @transform_1(%arg0: i32, %arg1: i32, %arg2: i32) -> (i32, i32) {
    %c0_i32 = arith.constant 0 : i32
    return %arg2, %arg1 : i32, i32
  }
  func.func @transform_2(%arg0: i32, %arg1: i32, %arg2: i32) -> (i32, i32) {
    %c0_i32 = arith.constant 0 : i32
    return %arg0, %arg1 : i32, i32
  }
  func.func @transform_3(%arg0: i32, %arg1: i32, %arg2: i32) -> (i32, i32, i32) {
    %c0_i32 = arith.constant 0 : i32
    %c0_i32_0 = arith.constant 0 : i32
    return %arg0, %c0_i32, %arg1 : i32, i32, i32
  }
  func.func @transform_4(%arg0: i32, %arg1: i32, %arg2: i32) -> (i32, i32, i32) {
    %c0_i32 = arith.constant 0 : i32
    %c0_i32_0 = arith.constant 0 : i32
    return %arg0, %c0_i32, %arg1 : i32, i32, i32
  }
}

</mosaic_0001>

<bundles_post_ra>
// kernel: _matmul_call.1
= control target key start
LH: loop header
LB: loop body
LE: loop exit
PB: predicated region body
PF: predicated region fallthrough
CT: control target
= control target key end

     0   :  { %10 = vsyncpa [#allocation4], 0  ;;  %v2277_v1 = vmov 0   ;;  %vm578_vm0 = vcmask 154624   ;;  %vm675_vm1 = vcmask 1040384   ;;  %vm676_vm2 = vcmask 1041408   ;;  %s3468_s0 = inlined_call_operand.vmem [shape: bf16[512,147], index: 0, kind: input, shape index: {}]   ;;  %s3469_s1 = inlined_call_operand.vmem [shape: bf16[147,64], index: 1, kind: input, shape index: {}]   ;;  %s3470_s2 = inlined_call_operand.vmem [shape: bf16[512,64], index: 2, kind: output, shape index: {0}]   ;;  %s3471_s3 = inlined_call_operand.hbm [shape: f32[1,1,64], index: 3, kind: output, shape index: {1}]   ;;  %s3472_s4 = inlined_call_operand.hbm [shape: f32[1,1,64], index: 4, kind: output, shape index: {2}]  }
   0x1   :  { %v2112_v0 = vld [vmem:[%s3469_s1] sm:$0xff]   ;;  %682 = vmatprep.subr.bf16.mxu0 %v2277_v1  ;;  %2087 = vmatprep.subr.bf16.mxu1 %v2277_v1  ;;  %v2113_v2 = vld [vmem:[%s3469_s1 + $0x8] sm:$0xff]   ;;  %v2114_v3 = vld [vmem:[%s3469_s1 + $0x10] sm:$0xff]   ;;  %v2278_v11 = vmov 65535   ;;  %vm21_vm3 = vcmask 523264   ;;  %v2279_v17 = vmov 0.0  }
   0x2   :  { %683 = vmatpush1.bf16.msra.mxu0 %v2112_v0  ;;  %2097 = vmatpush1.bf16.msra.mxu1 %v2112_v0  ;;  %v2115_v4 = vld [vmem:[%s3469_s1 + $0x18] sm:$0xff]   ;;  %v2124_v5 = vld [vmem:[%s3468_s0 + $0x4] ss:$8 sps:$4 sm:$0xff]   ;;  %v2118_v9 = vld [vmem:[%s3469_s1 + $0x30] sm:$0xff]   ;;  %v677_v12 = vsel %vm675_vm1, 4294967295, %v2278_v11  ;;  %22 = vst.msk [vmem:[#allocation2] sm:$0xff] %vm21_vm3, %v2279_v17 }
   0x3   :  { %684 = vmatprep.subr.bf16.mxu0 %v2277_v1  ;;  %2088 = vmatprep.subr.bf16.mxu1 %v2277_v1  ;;  %v2116_v6 = vld [vmem:[%s3469_s1 + $0x20] sm:$0xff]   ;;  %v2117_v7 = vld [vmem:[%s3469_s1 + $0x28] sm:$0xff]   ;;  %v2119_v10 = vld [vmem:[%s3469_s1 + $0x38] sm:$0xff]   ;;  %v678_v15 = vsel %vm676_vm2, %v677_v12, 0  ;;  %23 = vst.msk [vmem:[#allocation2 + $0x8] sm:$0xff] %vm21_vm3, %v2279_v17 }
   0x4   :  { %1927 = vmatprep.mubr.msk.bf16.mxu0 %vm578_vm0, %v2124_v5  ;;  %v2148_v8 = vld [vmem:[%s3468_s0 + $0x104] ss:$8 sps:$4 sm:$0xff]   ;;  %v2121_v14 = vld [vmem:[%s3469_s1 + $0x48] ss:$0 sps:$4 sm:$0x33]   ;;  %24 = vst.msk [vmem:[#allocation2 + $0x10] sm:$0xff] %vm21_vm3, %v2279_v17 }
   0x5   :  { %1943 = vmatprep.mubr.msk.bf16.mxu1 %vm578_vm0, %v2148_v8  ;;  %v2120_v13 = vld [vmem:[%s3469_s1 + $0x40] sm:$0xff]   ;;  %v2345_v16 = vand.u32 %v2121_v14, %v678_v15  ;;  %25 = vst.msk [vmem:[#allocation2 + $0x18] sm:$0xff] %vm21_vm3, %v2279_v17  ;;  %26 = vst.msk [vmem:[#allocation2 + $0x20] sm:$0xff] %vm21_vm3, %v2279_v17  ;;  %v2125_v20 = vld [vmem:[%s3468_s0 + $0x14] ss:$8 sps:$4 sm:$0xff]  }
   0x6   :  { %685 = vmatpush1.bf16.msra.mxu0 %v2113_v2  ;;  %2098 = vmatpush1.bf16.msra.mxu1 %v2113_v2  ;;  %27 = vst.msk [vmem:[#allocation2 + $0x28] sm:$0xff] %vm21_vm3, %v2279_v17  ;;  %28 = vst.msk [vmem:[#allocation2 + $0x30] sm:$0xff] %vm21_vm3, %v2279_v17  ;;  %v2122_v18 = vld [vmem:[%s3468_s0] ss:$8 sps:$4 sm:$0xff]   ;;  %v2152_v21 = vld [vmem:[%s3468_s0 + $0x114] ss:$8 sps:$4 sm:$0xff]  }
   0x7   :  { %686 = vmatprep.subr.bf16.mxu0 %v2277_v1  ;;  %2089 = vmatprep.subr.bf16.mxu1 %v2277_v1  ;;  %29 = vst.msk [vmem:[#allocation2 + $0x38] sm:$0xff] %vm21_vm3, %v2279_v17  ;;  %30 = vst.msk [vmem:[#allocation2 + $0x40] sm:$0xff] %vm21_vm3, %v2279_v17  ;;  %v2146_v19 = vld [vmem:[%s3468_s0 + $0x100] ss:$8 sps:$4 sm:$0xff]   ;;  %v2127_v22 = vld [vmem:[%s3468_s0 + $0x10] ss:$8 sps:$4 sm:$0xff]  }
   0x8   :  { %31 = vst.msk [vmem:[#allocation2 + $0x48] sm:$0xff] %vm21_vm3, %v2279_v17  ;;  %32 = vst.msk [vmem:[#allocation2 + $0x50] sm:$0xff] %vm21_vm3, %v2279_v17  ;;  %v2154_v23 = vld [vmem:[%s3468_s0 + $0x110] ss:$8 sps:$4 sm:$0xff]   ;;  %v2128_v24 = vld [vmem:[%s3468_s0 + $0x24] ss:$8 sps:$4 sm:$0xff]  }
   0x9   :  { %33 = vst.msk [vmem:[#allocation2 + $0x58] sm:$0xff] %vm21_vm3, %v2279_v17  ;;  %34 = vst.msk [vmem:[#allocation2 + $0x60] sm:$0xff] %vm21_vm3, %v2279_v17  ;;  %v2158_v25 = vld [vmem:[%s3468_s0 + $0x124] ss:$8 sps:$4 sm:$0xff]  }
   0xa   :  { %687 = vmatpush1.bf16.msra.mxu0 %v2114_v3  ;;  %2099 = vmatpush1.bf16.msra.mxu1 %v2114_v3  ;;  %35 = vst.msk [vmem:[#allocation2 + $0x68] sm:$0xff] %vm21_vm3, %v2279_v17  ;;  %36 = vst.msk [vmem:[#allocation2 + $0x70] sm:$0xff] %vm21_vm3, %v2279_v17 }
   0xb   :  { %688 = vmatprep.subr.bf16.mxu0 %v2277_v1  ;;  %2090 = vmatprep.subr.bf16.mxu1 %v2277_v1  ;;  %37 = vst.msk [vmem:[#allocation2 + $0x78] sm:$0xff] %vm21_vm3, %v2279_v17  ;;  %38 = vst.msk [vmem:[#allocation2 + $0x80] sm:$0xff] %vm21_vm3, %v2279_v17 }
   0xc   :  { %39 = vst.msk [vmem:[#allocation2 + $0x88] sm:$0xff] %vm21_vm3, %v2279_v17  ;;  %40 = vst.msk [vmem:[#allocation2 + $0x90] sm:$0xff] %vm21_vm3, %v2279_v17 }
   0xd   :  { %41 = vst.msk [vmem:[#allocation2 + $0x98] sm:$0xff] %vm21_vm3, %v2279_v17  ;;  %42 = vst.msk [vmem:[#allocation2 + $0xa0] sm:$0xff] %vm21_vm3, %v2279_v17 }
   0xe   :  { %689 = vmatpush1.bf16.msra.mxu0 %v2115_v4  ;;  %2100 = vmatpush1.bf16.msra.mxu1 %v2115_v4  ;;  %43 = vst.msk [vmem:[#allocation2 + $0xa8] sm:$0xff] %vm21_vm3, %v2279_v17  ;;  %44 = vst.msk [vmem:[#allocation2 + $0xb0] sm:$0xff] %vm21_vm3, %v2279_v17 }
   0xf   :  { %690 = vmatprep.subr.bf16.mxu0 %v2277_v1  ;;  %2091 = vmatprep.subr.bf16.mxu1 %v2277_v1  ;;  %45 = vst.msk [vmem:[#allocation2 + $0xb8] sm:$0xff] %vm21_vm3, %v2279_v17  ;;  %46 = vst.msk [vmem:[#allocation2 + $0xc0] sm:$0xff] %vm21_vm3, %v2279_v17 }
  0x10   :  { %47 = vst.msk [vmem:[#allocation2 + $0xc8] sm:$0xff] %vm21_vm3, %v2279_v17  ;;  %48 = vst.msk [vmem:[#allocation2 + $0xd0] sm:$0xff] %vm21_vm3, %v2279_v17 }
  0x11   :  { %49 = vst.msk [vmem:[#allocation2 + $0xd8] sm:$0xff] %vm21_vm3, %v2279_v17  ;;  %50 = vst.msk [vmem:[#allocation2 + $0xe0] sm:$0xff] %vm21_vm3, %v2279_v17 }
  0x12   :  { %691 = vmatpush1.bf16.msra.mxu0 %v2116_v6  ;;  %2101 = vmatpush1.bf16.msra.mxu1 %v2116_v6  ;;  %51 = vst.msk [vmem:[#allocation2 + $0xe8] sm:$0xff] %vm21_vm3, %v2279_v17  ;;  %52 = vst.msk [vmem:[#allocation2 + $0xf0] sm:$0xff] %vm21_vm3, %v2279_v17 }
  0x13   :  { %692 = vmatprep.subr.bf16.mxu0 %v2277_v1  ;;  %2092 = vmatprep.subr.bf16.mxu1 %v2277_v1  ;;  %53 = vst.msk [vmem:[#allocation2 + $0xf8] sm:$0xff] %vm21_vm3, %v2279_v17  ;;  %54 = vst.msk [vmem:[#allocation2 + $0x100] sm:$0xff] %vm21_vm3, %v2279_v17 }
  0x14   :  { %55 = vst.msk [vmem:[#allocation2 + $0x108] sm:$0xff] %vm21_vm3, %v2279_v17  ;;  %56 = vst.msk [vmem:[#allocation2 + $0x110] sm:$0xff] %vm21_vm3, %v2279_v17 }
  0x15   :  { %57 = vst.msk [vmem:[#allocation2 + $0x118] sm:$0xff] %vm21_vm3, %v2279_v17  ;;  %58 = vst.msk [vmem:[#allocation2 + $0x120] sm:$0xff] %vm21_vm3, %v2279_v17 }
  0x16   :  { %693 = vmatpush1.bf16.msra.mxu0 %v2117_v7  ;;  %2102 = vmatpush1.bf16.msra.mxu1 %v2117_v7  ;;  %59 = vst.msk [vmem:[#allocation2 + $0x128] sm:$0xff] %vm21_vm3, %v2279_v17  ;;  %60 = vst.msk [vmem:[#allocation2 + $0x130] sm:$0xff] %vm21_vm3, %v2279_v17 }
  0x17   :  { %694 = vmatprep.subr.bf16.mxu0 %v2277_v1  ;;  %2093 = vmatprep.subr.bf16.mxu1 %v2277_v1  ;;  %61 = vst.msk [vmem:[#allocation2 + $0x138] sm:$0xff] %vm21_vm3, %v2279_v17  ;;  %62 = vst.msk [vmem:[#allocation2 + $0x140] sm:$0xff] %vm21_vm3, %v2279_v17 }
  0x18   :  { %63 = vst.msk [vmem:[#allocation2 + $0x148] sm:$0xff] %vm21_vm3, %v2279_v17  ;;  %64 = vst.msk [vmem:[#allocation2 + $0x150] sm:$0xff] %vm21_vm3, %v2279_v17 }
  0x19   :  { %65 = vst.msk [vmem:[#allocation2 + $0x158] sm:$0xff] %vm21_vm3, %v2279_v17  ;;  %66 = vst.msk [vmem:[#allocation2 + $0x160] sm:$0xff] %vm21_vm3, %v2279_v17 }
  0x1a   :  { %695 = vmatpush1.bf16.msra.mxu0 %v2118_v9  ;;  %2103 = vmatpush1.bf16.msra.mxu1 %v2118_v9  ;;  %67 = vst.msk [vmem:[#allocation2 + $0x168] sm:$0xff] %vm21_vm3, %v2279_v17  ;;  %68 = vst.msk [vmem:[#allocation2 + $0x170] sm:$0xff] %vm21_vm3, %v2279_v17 }
  0x1b   :  { %696 = vmatprep.subr.bf16.mxu0 %v2277_v1  ;;  %2094 = vmatprep.subr.bf16.mxu1 %v2277_v1  ;;  %69 = vst.msk [vmem:[#allocation2 + $0x178] sm:$0xff] %vm21_vm3, %v2279_v17  ;;  %70 = vst.msk [vmem:[#allocation2 + $0x180] sm:$0xff] %vm21_vm3, %v2279_v17 }
  0x1c   :  { %71 = vst.msk [vmem:[#allocation2 + $0x188] sm:$0xff] %vm21_vm3, %v2279_v17  ;;  %72 = vst.msk [vmem:[#allocation2 + $0x190] sm:$0xff] %vm21_vm3, %v2279_v17 }
  0x1d   :  { %73 = vst.msk [vmem:[#allocation2 + $0x198] sm:$0xff] %vm21_vm3, %v2279_v17  ;;  %74 = vst.msk [vmem:[#allocation2 + $0x1a0] sm:$0xff] %vm21_vm3, %v2279_v17 }
  0x1e   :  { %697 = vmatpush1.bf16.msra.mxu0 %v2119_v10  ;;  %2104 = vmatpush1.bf16.msra.mxu1 %v2119_v10  ;;  %75 = vst.msk [vmem:[#allocation2 + $0x1a8] sm:$0xff] %vm21_vm3, %v2279_v17  ;;  %76 = vst.msk [vmem:[#allocation2 + $0x1b0] sm:$0xff] %vm21_vm3, %v2279_v17 }
  0x1f   :  { %698 = vmatprep.subr.bf16.mxu0 %v2277_v1  ;;  %2095 = vmatprep.subr.bf16.mxu1 %v2277_v1  ;;  %77 = vst.msk [vmem:[#allocation2 + $0x1b8] sm:$0xff] %vm21_vm3, %v2279_v17  ;;  %78 = vst.msk [vmem:[#allocation2 + $0x1c0] sm:$0xff] %vm21_vm3, %v2279_v17 }
  0x20   :  { %79 = vst.msk [vmem:[#allocation2 + $0x1c8] sm:$0xff] %vm21_vm3, %v2279_v17  ;;  %80 = vst.msk [vmem:[#allocation2 + $0x1d0] sm:$0xff] %vm21_vm3, %v2279_v17 }
  0x21   :  { %81 = vst.msk [vmem:[#allocation2 + $0x1d8] sm:$0xff] %vm21_vm3, %v2279_v17  ;;  %82 = vst.msk [vmem:[#allocation2 + $0x1e0] sm:$0xff] %vm21_vm3, %v2279_v17 }
  0x22   :  { %699 = vmatpush1.bf16.msra.mxu0 %v2120_v13  ;;  %2105 = vmatpush1.bf16.msra.mxu1 %v2120_v13  ;;  %83 = vst.msk [vmem:[#allocation2 + $0x1e8] sm:$0xff] %vm21_vm3, %v2279_v17  ;;  %84 = vst.msk [vmem:[#allocation2 + $0x1f0] sm:$0xff] %vm21_vm3, %v2279_v17 }
  0x23   :  { %700 = vmatprep.subr.bf16.mxu0 %v2277_v1  ;;  %2096 = vmatprep.subr.bf16.mxu1 %v2277_v1  ;;  %85 = vst.msk [vmem:[#allocation2 + $0x1f8] sm:$0xff] %vm21_vm3, %v2279_v17 }
  0x26   :  { %701 = vmatpush1.bf16.msra.mxu0 %v2345_v16  ;;  %2106 = vmatpush1.bf16.msra.mxu1 %v2345_v16 }
  0x29   :  { %715 = vmatmul.mubr.bf16.vlgmr.msra.gmra.mrb[0].mxu0 %v2122_v18  ;;  %843 = vmatmul.mubr.bf16.vlgmr.msra.gmra.mrb[0].mxu1 %v2146_v19 }
  0x2a   :  { %1928 = vmatprep.mubr.msk.bf16.mxu0 %vm578_vm0, %v2125_v20  ;;  %1944 = vmatprep.mubr.msk.bf16.mxu1 %vm578_vm0, %v2152_v21 }
  0x31   :  { %723 = vmatmul.mubr.bf16.gmra.mrb[4].mxu0 %v2127_v22  ;;  %851 = vmatmul.mubr.bf16.gmra.mrb[4].mxu1 %v2154_v23 }
  0x32   :  { %1929 = vmatprep.mubr.msk.bf16.mxu0 %vm578_vm0, %v2128_v24  ;;  %1945 = vmatprep.mubr.msk.bf16.mxu1 %vm578_vm0, %v2158_v25 }
  0x33   :  { %11 = vsyncpa [#allocation6], 0  ;;  %v2130_v26 = vld [vmem:[%s3468_s0 + $0x20] ss:$8 sps:$4 sm:$0xff]   ;;  %v2131_v28 = vld [vmem:[%s3468_s0 + $0x34] ss:$8 sps:$4 sm:$0xff]  }
  0x34   :  { %v2160_v27 = vld [vmem:[%s3468_s0 + $0x120] ss:$8 sps:$4 sm:$0xff]   ;;  %v2164_v29 = vld [vmem:[%s3468_s0 + $0x134] ss:$8 sps:$4 sm:$0xff]   ;;  %v2133_v30 = vld [vmem:[%s3468_s0 + $0x30] ss:$8 sps:$4 sm:$0xff]  }
  0x35   :  { %v2166_v31 = vld [vmem:[%s3468_s0 + $0x130] ss:$8 sps:$4 sm:$0xff]   ;;  %v2134_v32 = vld [vmem:[%s3468_s0 + $0x44] ss:$8 sps:$4 sm:$0xff]   ;;  %v2136_v34 = vld [vmem:[%s3468_s0 + $0x40] ss:$8 sps:$4 sm:$0xff]  }
  0x36   :  { %v2170_v33 = vld [vmem:[%s3468_s0 + $0x144] ss:$8 sps:$4 sm:$0xff]   ;;  %v2172_v35 = vld [vmem:[%s3468_s0 + $0x140] ss:$8 sps:$4 sm:$0xff]   ;;  %v2137_v36 = vld [vmem:[%s3468_s0 + $0x54] ss:$8 sps:$4 sm:$0xff]  }
  0x37   :  { %v2176_v37 = vld [vmem:[%s3468_s0 + $0x154] ss:$8 sps:$4 sm:$0xff]   ;;  %v2139_v38 = vld [vmem:[%s3468_s0 + $0x50] ss:$8 sps:$4 sm:$0xff]   ;;  %v2140_v40 = vld [vmem:[%s3468_s0 + $0x64] ss:$8 sps:$4 sm:$0xff]  }
  0x38   :  { %v2178_v39 = vld [vmem:[%s3468_s0 + $0x150] ss:$8 sps:$4 sm:$0xff]   ;;  %v2182_v41 = vld [vmem:[%s3468_s0 + $0x164] ss:$8 sps:$4 sm:$0xff]   ;;  %v2142_v42 = vld [vmem:[%s3468_s0 + $0x60] ss:$8 sps:$4 sm:$0xff]  }
  0x39   :  { %731 = vmatmul.mubr.bf16.gmra.mrb[8].mxu0 %v2130_v26  ;;  %859 = vmatmul.mubr.bf16.gmra.mrb[8].mxu1 %v2160_v27  ;;  %v2184_v43 = vld [vmem:[%s3468_s0 + $0x160] ss:$8 sps:$4 sm:$0xff]   ;;  %v2143_v44 = vld [vmem:[%s3468_s0 + $0x74] ss:$8 sps:$4 sm:$0xff]   ;;  %v2145_v46 = vld [vmem:[%s3468_s0 + $0x70] ss:$8 sps:$4 sm:$0xff]  }
  0x3a   :  { %1930 = vmatprep.mubr.msk.bf16.mxu0 %vm578_vm0, %v2131_v28  ;;  %1946 = vmatprep.mubr.msk.bf16.mxu1 %vm578_vm0, %v2164_v29  ;;  %v2188_v45 = vld [vmem:[%s3468_s0 + $0x174] ss:$8 sps:$4 sm:$0xff]   ;;  %v2190_v47 = vld [vmem:[%s3468_s0 + $0x170] ss:$8 sps:$4 sm:$0xff]   ;;  %v2149_v48 = vld [vmem:[%s3468_s0 + $0x84] ss:$8 sps:$4 sm:$0xff]  }
  0x3b   :  { %v2194_v49 = vld [vmem:[%s3468_s0 + $0x184] ss:$8 sps:$4 sm:$0xff]   ;;  %v2151_v50 = vld [vmem:[%s3468_s0 + $0x80] ss:$8 sps:$4 sm:$0xff]   ;;  %v2155_v52 = vld [vmem:[%s3468_s0 + $0x94] ss:$8 sps:$4 sm:$0xff]  }
  0x3c   :  { %v2196_v51 = vld [vmem:[%s3468_s0 + $0x180] ss:$8 sps:$4 sm:$0xff]   ;;  %v2197_v53 = vld [vmem:[%s3468_s0 + $0x194] ss:$8 sps:$4 sm:$0xff]   ;;  %v2157_v54 = vld [vmem:[%s3468_s0 + $0x90] ss:$8 sps:$4 sm:$0xff]  }
  0x3d   :  { %v2199_v55 = vld [vmem:[%s3468_s0 + $0x190] ss:$8 sps:$4 sm:$0xff]   ;;  %v2161_v56 = vld [vmem:[%s3468_s0 + $0xa4] ss:$8 sps:$4 sm:$0xff]   ;;  %v2163_v58 = vld [vmem:[%s3468_s0 + $0xa0] ss:$8 sps:$4 sm:$0xff]  }
  0x3e   :  { %v2200_v57 = vld [vmem:[%s3468_s0 + $0x1a4] ss:$8 sps:$4 sm:$0xff]   ;;  %v2202_v59 = vld [vmem:[%s3468_s0 + $0x1a0] ss:$8 sps:$4 sm:$0xff]   ;;  %v2167_v60 = vld [vmem:[%s3468_s0 + $0xb4] ss:$8 sps:$4 sm:$0xff]  }
  0x3f   :  { %v2203_v61 = vld [vmem:[%s3468_s0 + $0x1b4] ss:$8 sps:$4 sm:$0xff]   ;;  %v2169_v62 = vld [vmem:[%s3468_s0 + $0xb0] ss:$8 sps:$4 sm:$0xff]   ;;  %v2173_v0 = vld [vmem:[%s3468_s0 + $0xc4] ss:$8 sps:$4 sm:$0xff]  }
  0x40   :  { %v2205_v63 = vld [vmem:[%s3468_s0 + $0x1b0] ss:$8 sps:$4 sm:$0xff]   ;;  %v2206_v1 = vld [vmem:[%s3468_s0 + $0x1c4] ss:$8 sps:$4 sm:$0xff]   ;;  %v2175_v2 = vld [vmem:[%s3468_s0 + $0xc0] ss:$8 sps:$4 sm:$0xff]  }
  0x41   :  { %739 = vmatmul.mubr.bf16.gmra.mrb[12].mxu0 %v2133_v30  ;;  %867 = vmatmul.mubr.bf16.gmra.mrb[12].mxu1 %v2166_v31  ;;  %v2208_v3 = vld [vmem:[%s3468_s0 + $0x1c0] ss:$8 sps:$4 sm:$0xff]   ;;  %v2179_v4 = vld [vmem:[%s3468_s0 + $0xd4] ss:$8 sps:$4 sm:$0xff]   ;;  %v2181_v6 = vld [vmem:[%s3468_s0 + $0xd0] ss:$8 sps:$4 sm:$0xff]  }
  0x42   :  { %1931 = vmatprep.mubr.msk.bf16.mxu0 %vm578_vm0, %v2134_v32  ;;  %1947 = vmatprep.mubr.msk.bf16.mxu1 %vm578_vm0, %v2170_v33  ;;  %v2209_v5 = vld [vmem:[%s3468_s0 + $0x1d4] ss:$8 sps:$4 sm:$0xff]   ;;  %v2211_v7 = vld [vmem:[%s3468_s0 + $0x1d0] ss:$8 sps:$4 sm:$0xff]   ;;  %v2185_v8 = vld [vmem:[%s3468_s0 + $0xe4] ss:$8 sps:$4 sm:$0xff]  }
  0x43   :  { %v2212_v9 = vld [vmem:[%s3468_s0 + $0x1e4] ss:$8 sps:$4 sm:$0xff]   ;;  %v2187_v10 = vld [vmem:[%s3468_s0 + $0xe0] ss:$8 sps:$4 sm:$0xff]   ;;  %v2191_v12 = vld [vmem:[%s3468_s0 + $0xf4] ss:$8 sps:$4 sm:$0xff]  }
  0x44   :  { %v2214_v11 = vld [vmem:[%s3468_s0 + $0x1e0] ss:$8 sps:$4 sm:$0xff]   ;;  %v2215_v13 = vld [vmem:[%s3468_s0 + $0x1f4] ss:$8 sps:$4 sm:$0xff]   ;;  %v2193_v14 = vld [vmem:[%s3468_s0 + $0xf0] ss:$8 sps:$4 sm:$0xff]  }
  0x45   :  { %v2217_v15 = vld [vmem:[%s3468_s0 + $0x1f0] ss:$8 sps:$4 sm:$0xff]   ;;  %v86_v16 = vld [vmem:[#allocation2] sm:$0xff]  ;;  %v87_v19 = vld [vmem:[#allocation2 + $0x8] sm:$0xff]  ;;  %vm1423_vm4 = vcmask 519168   ;;  %vm1621_vm5 = vcmask 516096  }
  0x46   :  { %v118_v17 = vld [vmem:[#allocation2 + $0x100] sm:$0xff]  ;;  %v119_v21 = vld [vmem:[#allocation2 + $0x108] sm:$0xff]  ;;  %v88_v32 = vld [vmem:[#allocation2 + $0x10] sm:$0xff]  ;;  %s2281_s17 = smov [#allocation5]  }
  0x47   :  { %v120_v33 = vld [vmem:[#allocation2 + $0x110] sm:$0xff]  ;;  %s1839_s18 = sshll.u32 %s2281_s17, 4  ;;  %s3435_s18 = int_to_ptr.vmem [resolvable:$true] %s1839_s18 }
  0x49   :  { %747 = vmatmul.mubr.bf16.gmra.mrb[16].mxu0 %v2136_v34  ;;  %875 = vmatmul.mubr.bf16.gmra.mrb[16].mxu1 %v2172_v35  ;;  %v89_v35 = vld [vmem:[#allocation2 + $0x18] sm:$0xff] }
  0x4a   :  { %1932 = vmatprep.mubr.msk.bf16.mxu0 %vm578_vm0, %v2137_v36  ;;  %1948 = vmatprep.mubr.msk.bf16.mxu1 %vm578_vm0, %v2176_v37 }
  0x51   :  { %755 = vmatmul.mubr.bf16.gmra.mrb[20].mxu0 %v2139_v38  ;;  %883 = vmatmul.mubr.bf16.gmra.mrb[20].mxu1 %v2178_v39 }
  0x52   :  { %1933 = vmatprep.mubr.msk.bf16.mxu0 %vm578_vm0, %v2140_v40  ;;  %1949 = vmatprep.mubr.msk.bf16.mxu1 %vm578_vm0, %v2182_v41  ;;  %v121_v41 = vld [vmem:[#allocation2 + $0x118] sm:$0xff] }
  0x59   :  { %763 = vmatmul.mubr.bf16.gmra.mrb[24].mxu0 %v2142_v42  ;;  %891 = vmatmul.mubr.bf16.gmra.mrb[24].mxu1 %v2184_v43 }
  0x5a   :  { %1934 = vmatprep.mubr.msk.bf16.mxu0 %vm578_vm0, %v2143_v44  ;;  %1950 = vmatprep.mubr.msk.bf16.mxu1 %vm578_vm0, %v2188_v45 }
  0x61   :  { %771 = vmatmul.mubr.bf16.gmra.mrb[28].mxu0 %v2145_v46  ;;  %899 = vmatmul.mubr.bf16.gmra.mrb[28].mxu1 %v2190_v47 }
  0x62   :  { %1935 = vmatprep.mubr.msk.bf16.mxu0 %vm578_vm0, %v2149_v48  ;;  %1951 = vmatprep.mubr.msk.bf16.mxu1 %vm578_vm0, %v2194_v49 }
  0x69   :  { %779 = vmatmul.mubr.bf16.gmra.mrb[32].mxu0 %v2151_v50  ;;  %907 = vmatmul.mubr.bf16.gmra.mrb[32].mxu1 %v2196_v51 }
  0x6a   :  { %1936 = vmatprep.mubr.msk.bf16.mxu0 %vm578_vm0, %v2155_v52  ;;  %1952 = vmatprep.mubr.msk.bf16.mxu1 %vm578_vm0, %v2197_v53 }
  0x71   :  { %787 = vmatmul.mubr.bf16.gmra.mrb[36].mxu0 %v2157_v54  ;;  %915 = vmatmul.mubr.bf16.gmra.mrb[36].mxu1 %v2199_v55  ;;  %v90_v55 = vld [vmem:[#allocation2 + $0x20] sm:$0xff] }
  0x72   :  { %1937 = vmatprep.mubr.msk.bf16.mxu0 %vm578_vm0, %v2161_v56  ;;  %1953 = vmatprep.mubr.msk.bf16.mxu1 %vm578_vm0, %v2200_v57  ;;  %v122_v57 = vld [vmem:[#allocation2 + $0x120] sm:$0xff] }
  0x79   :  { %795 = vmatmul.mubr.bf16.gmra.mrb[40].mxu0 %v2163_v58  ;;  %923 = vmatmul.mubr.bf16.gmra.mrb[40].mxu1 %v2202_v59  ;;  %v91_v59 = vld [vmem:[#allocation2 + $0x28] sm:$0xff] }
  0x7a   :  { %1938 = vmatprep.mubr.msk.bf16.mxu0 %vm578_vm0, %v2167_v60  ;;  %1954 = vmatprep.mubr.msk.bf16.mxu1 %vm578_vm0, %v2203_v61 }
  0x81   :  { %803 = vmatmul.mubr.bf16.gmra.mrb[44].mxu0 %v2169_v62  ;;  %931 = vmatmul.mubr.bf16.gmra.mrb[44].mxu1 %v2205_v63 }
  0x82   :  { %1939 = vmatprep.mubr.msk.bf16.mxu0 %vm578_vm0, %v2173_v0  ;;  %1955 = vmatprep.mubr.msk.bf16.mxu1 %vm578_vm0, %v2206_v1 }
  0x89   :  { %811 = vmatmul.mubr.bf16.gmra.mrb[48].mxu0 %v2175_v2  ;;  %939 = vmatmul.mubr.bf16.gmra.mrb[48].mxu1 %v2208_v3 }
  0x8a   :  { %1940 = vmatprep.mubr.msk.bf16.mxu0 %vm578_vm0, %v2179_v4  ;;  %1956 = vmatprep.mubr.msk.bf16.mxu1 %vm578_vm0, %v2209_v5 }
  0x91   :  { %819 = vmatmul.mubr.bf16.gmra.mrb[52].mxu0 %v2181_v6  ;;  %947 = vmatmul.mubr.bf16.gmra.mrb[52].mxu1 %v2211_v7 }
  0x92   :  { %1941 = vmatprep.mubr.msk.bf16.mxu0 %vm578_vm0, %v2185_v8  ;;  %1957 = vmatprep.mubr.msk.bf16.mxu1 %vm578_vm0, %v2212_v9 }
  0x99   :  { %827 = vmatmul.mubr.bf16.gmra.mrb[56].mxu0 %v2187_v10  ;;  %955 = vmatmul.mubr.bf16.gmra.mrb[56].mxu1 %v2214_v11  ;;  %v123_v11 = vld [vmem:[#allocation2 + $0x128] sm:$0xff] }
  0x9a   :  { %1942 = vmatprep.mubr.msk.bf16.mxu0 %vm578_vm0, %v2191_v12  ;;  %1958 = vmatprep.mubr.msk.bf16.mxu1 %vm578_vm0, %v2215_v13 }
  0xa1   :  { %835 = vmatmul.mubr.bf16.gmra.mrb[60].mxu0 %v2193_v14  ;;  %963 = vmatmul.mubr.bf16.gmra.mrb[60].mxu1 %v2217_v15  ;;  %v92_v14 = vld [vmem:[#allocation2 + $0x30] sm:$0xff] }
  0xfc   :  { %v716_v18 = vpop.f32.mrb[0].mxu0  ;;  %v844_v20 = vpop.f32.mrb[0].mxu1 }
  0xfd   :  { %v971_v22 = vadd.f32 %v716_v18, %v86_v16  ;;  %v718_v23 = vpop.f32.mrb[1].mxu0  ;;  %v1003_v24 = vadd.f32 %v844_v20, %v118_v17  ;;  %v846_v25 = vpop.f32.mrb[1].mxu1  ;;  %v124_v16 = vld [vmem:[#allocation2 + $0x130] sm:$0xff] }
  0xfe   :  { %v719_v26 = vpop.f32.mrb[2].mxu0  ;;  %v847_v27 = vpop.f32.mrb[2].mxu1 }
  0xff   :  { %1036 = vst.msk [vmem:[#allocation2] sm:$0xff] %vm21_vm3, %v971_v22  ;;  %v972_v28 = vadd.f32 %v719_v26, %v87_v19  ;;  %v721_v29 = vpop.f32.mrb[3].mxu0  ;;  %1068 = vst.msk [vmem:[#allocation2 + $0x100] sm:$0xff] %vm21_vm3, %v1003_v24  ;;  %v1004_v30 = vadd.f32 %v847_v27, %v119_v21  ;;  %v849_v31 = vpop.f32.mrb[3].mxu1  ;;  %v93_v19 = vld [vmem:[#allocation2 + $0x38] sm:$0xff] }
 0x101   :  { %1037 = vst.msk [vmem:[#allocation2 + $0x8] sm:$0xff] %vm21_vm3, %v972_v28  ;;  %1069 = vst.msk [vmem:[#allocation2 + $0x108] sm:$0xff] %vm21_vm3, %v1004_v30 }
 0x104   :  { %v724_v34 = vpop.f32.mrb[4].mxu0  ;;  %v852_v36 = vpop.f32.mrb[4].mxu1 }
 0x105   :  { %v973_v37 = vadd.f32 %v724_v34, %v88_v32  ;;  %v726_v38 = vpop.f32.mrb[5].mxu0  ;;  %v1005_v39 = vadd.f32 %v852_v36, %v120_v33  ;;  %v854_v40 = vpop.f32.mrb[5].mxu1  ;;  %v125_v32 = vld [vmem:[#allocation2 + $0x138] sm:$0xff] }
 0x106   :  { %v2697_v42 = vld [vmem:[#allocation2] sm:$0xff]  ;;  %v727_v43 = vpop.f32.mrb[6].mxu0  ;;  %v855_v45 = vpop.f32.mrb[6].mxu1 }
 0x107   :  { %v1135_v44 = vld [vmem:[#allocation2 + $0x100] sm:$0xff]  ;;  %v2023_v46 = vpack.c.bf16 %v2697_v42, %v2697_v42  ;;  %1038 = vst.msk [vmem:[#allocation2 + $0x10] sm:$0xff] %vm21_vm3, %v973_v37  ;;  %v974_v47 = vadd.f32 %v727_v43, %v89_v35  ;;  %v729_v48 = vpop.f32.mrb[7].mxu0  ;;  %1070 = vst.msk [vmem:[#allocation2 + $0x110] sm:$0xff] %vm21_vm3, %v1005_v39  ;;  %v857_v49 = vpop.f32.mrb[7].mxu1  ;;  %v1006_v53 = vadd.f32 %v855_v45, %v121_v41  ;;  %v95_v41 = vld [vmem:[#allocation2 + $0x48] sm:$0xff] }
 0x108   :  { %v2703_v50 = vld [vmem:[#allocation2 + $0x8] sm:$0xff]  ;;  %v2055_v51 = vpack.c.bf16 %v1135_v44, %v1135_v44  ;;  %v94_v37 = vld [vmem:[#allocation2 + $0x40] sm:$0xff] }
 0x109   :  { %v1136_v52 = vld [vmem:[#allocation2 + $0x108] sm:$0xff]  ;;  %1424 = vst.msk [vmem:[%s3470_s2] sm:$0xf] %vm1423_vm4, %v2023_v46  ;;  %v2024_v54 = vpack.c.bf16 %v2703_v50, %v2703_v50  ;;  %v126_v39 = vld [vmem:[#allocation2 + $0x140] sm:$0xff] }
 0x10a   :  { %1039 = vst.msk [vmem:[#allocation2 + $0x18] sm:$0xff] %vm21_vm3, %v974_v47  ;;  %v2056_v56 = vpack.c.bf16 %v1136_v52, %v1136_v52  ;;  %1071 = vst.msk [vmem:[#allocation2 + $0x118] sm:$0xff] %vm21_vm3, %v1006_v53 }
 0x10b   :  { %1456 = vst.msk [vmem:[%s3470_s2 + $0x80] sm:$0xf] %vm1423_vm4, %v2055_v51  ;;  %1425 = vst.msk [vmem:[%s3470_s2 + $0x4] sm:$0xf] %vm1423_vm4, %v2024_v54 }
 0x10c   :  { %v732_v58 = vpop.f32.mrb[8].mxu0  ;;  %1457 = vst.msk [vmem:[%s3470_s2 + $0x84] sm:$0xf] %vm1423_vm4, %v2056_v56  ;;  %v860_v60 = vpop.f32.mrb[8].mxu1 }
 0x10d   :  { %v975_v61 = vadd.f32 %v732_v58, %v90_v55  ;;  %v734_v62 = vpop.f32.mrb[9].mxu0  ;;  %v1007_v63 = vadd.f32 %v860_v60, %v122_v57  ;;  %v862_v0 = vpop.f32.mrb[9].mxu1  ;;  %v127_v58 = vld [vmem:[#allocation2 + $0x148] sm:$0xff] }
 0x10e   :  { %v2725_v1 = vld [vmem:[#allocation2 + $0x10] sm:$0xff]  ;;  %v735_v2 = vpop.f32.mrb[10].mxu0  ;;  %v863_v4 = vpop.f32.mrb[10].mxu1 }
 0x10f   :  { %v1137_v3 = vld [vmem:[#allocation2 + $0x110] sm:$0xff]  ;;  %v2025_v5 = vpack.c.bf16 %v2725_v1, %v2725_v1  ;;  %1040 = vst.msk [vmem:[#allocation2 + $0x20] sm:$0xff] %vm21_vm3, %v975_v61  ;;  %v976_v6 = vadd.f32 %v735_v2, %v91_v59  ;;  %v737_v7 = vpop.f32.mrb[11].mxu0  ;;  %1072 = vst.msk [vmem:[#allocation2 + $0x120] sm:$0xff] %vm21_vm3, %v1007_v63  ;;  %v865_v8 = vpop.f32.mrb[11].mxu1  ;;  %v1008_v17 = vadd.f32 %v863_v4, %v123_v11 }
 0x110   :  { %v2057_v10 = vpack.c.bf16 %v1137_v3, %v1137_v3  ;;  %v96_v63 = vld [vmem:[#allocation2 + $0x50] sm:$0xff]  ;;  %v1624_v8 = vmul.f32 %v2703_v50, %v2703_v50 }
 0x111   :  { %v2731_v9 = vld [vmem:[#allocation2 + $0x18] sm:$0xff]  ;;  %1426 = vst.msk [vmem:[%s3470_s2 + $0x8] sm:$0xf] %vm1423_vm4, %v2025_v5  ;;  %v128_v2 = vld [vmem:[#allocation2 + $0x150] sm:$0xff] }
 0x112   :  { %v2026_v12 = vpack.c.bf16 %v2731_v9, %v2731_v9  ;;  %1041 = vst.msk [vmem:[#allocation2 + $0x28] sm:$0xff] %vm21_vm3, %v976_v6  ;;  %v1138_v13 = vld [vmem:[#allocation2 + $0x118] sm:$0xff]  ;;  %1073 = vst.msk [vmem:[#allocation2 + $0x128] sm:$0xff] %vm21_vm3, %v1008_v17 }
 0x113   :  { %1458 = vst.msk [vmem:[%s3470_s2 + $0x88] sm:$0xf] %vm1423_vm4, %v2057_v10  ;;  %v2058_v15 = vpack.c.bf16 %v1138_v13, %v1138_v13  ;;  %v97_v5 = vld [vmem:[#allocation2 + $0x58] sm:$0xff] }
 0x114   :  { %1427 = vst.msk [vmem:[%s3470_s2 + $0xc] sm:$0xf] %vm1423_vm4, %v2026_v12  ;;  %v740_v18 = vpop.f32.mrb[12].mxu0  ;;  %v868_v20 = vpop.f32.mrb[12].mxu1 }
 0x115   :  { %1459 = vst.msk [vmem:[%s3470_s2 + $0x8c] sm:$0xf] %vm1423_vm4, %v2058_v15  ;;  %v977_v21 = vadd.f32 %v740_v18, %v92_v14  ;;  %v742_v22 = vpop.f32.mrb[13].mxu0  ;;  %v1009_v23 = vadd.f32 %v868_v20, %v124_v16  ;;  %v870_v24 = vpop.f32.mrb[13].mxu1  ;;  %v1623_v14 = vmul.f32 %v2697_v42, %v2697_v42  ;;  %v1489_v18 = vsel %vm21_vm3, %v2703_v50, 0.0 }
 0x116   :  { %v2753_v25 = vld [vmem:[#allocation2 + $0x20] sm:$0xff]  ;;  %v743_v26 = vpop.f32.mrb[14].mxu0  ;;  %v871_v28 = vpop.f32.mrb[14].mxu1  ;;  %v129_v24 = vld [vmem:[#allocation2 + $0x158] sm:$0xff]  ;;  %v1488_v50 = vsel %vm21_vm3, %v2697_v42, 0.0 }
 0x117   :  { %v1139_v27 = vld [vmem:[#allocation2 + $0x120] sm:$0xff]  ;;  %v2027_v29 = vpack.c.bf16 %v2753_v25, %v2753_v25  ;;  %1042 = vst.msk [vmem:[#allocation2 + $0x30] sm:$0xff] %vm21_vm3, %v977_v21  ;;  %v978_v30 = vadd.f32 %v743_v26, %v93_v19  ;;  %v745_v31 = vpop.f32.mrb[15].mxu0  ;;  %1074 = vst.msk [vmem:[#allocation2 + $0x130] sm:$0xff] %vm21_vm3, %v1009_v23  ;;  %v873_v33 = vpop.f32.mrb[15].mxu1  ;;  %v1010_v38 = vadd.f32 %v871_v28, %v125_v32 }
 0x118   :  { %v2059_v35 = vpack.c.bf16 %v1139_v27, %v1139_v27  ;;  %v1625_v19 = vmul.f32 %v2725_v1, %v2725_v1  ;;  %v1490_v32 = vadd.f32 %v1489_v18, %v1488_v50  ;;  %v98_v33 = vld [vmem:[#allocation2 + $0x60] sm:$0xff] }
 0x119   :  { %v2759_v34 = vld [vmem:[#allocation2 + $0x28] sm:$0xff]  ;;  %1428 = vst.msk [vmem:[%s3470_s2 + $0x10] sm:$0xf] %vm1423_vm4, %v2027_v29  ;;  %v1688_v29 = vsel %vm21_vm3, %v1624_v8, 0.0 }
 0x11a   :  { %v2028_v36 = vpack.c.bf16 %v2759_v34, %v2759_v34  ;;  %1043 = vst.msk [vmem:[#allocation2 + $0x38] sm:$0xff] %vm21_vm3, %v978_v30  ;;  %v1140_v43 = vld [vmem:[#allocation2 + $0x128] sm:$0xff]  ;;  %1075 = vst.msk [vmem:[#allocation2 + $0x138] sm:$0xff] %vm21_vm3, %v1010_v38  ;;  %v1491_v30 = vsel %vm21_vm3, %v2725_v1, 0.0  ;;  %v1687_v1 = vsel %vm21_vm3, %v1623_v14, 0.0  ;;  %v1497_v14 = vsel %vm21_vm3, %v2759_v34, 0.0 }
 0x11b   :  { %1460 = vst.msk [vmem:[%s3470_s2 + $0x90] sm:$0xf] %vm1423_vm4, %v2059_v35  ;;  %v2060_v47 = vpack.c.bf16 %v1140_v43, %v1140_v43  ;;  %v130_v35 = vld [vmem:[#allocation2 + $0x160] sm:$0xff]  ;;  %v99_v43 = vld [vmem:[#allocation2 + $0x68] sm:$0xff] }
 0x11c   :  { %1429 = vst.msk [vmem:[%s3470_s2 + $0x14] sm:$0xf] %vm1423_vm4, %v2028_v36  ;;  %v748_v40 = vpop.f32.mrb[16].mxu0  ;;  %v876_v44 = vpop.f32.mrb[16].mxu1  ;;  %v1690_v36 = vsel %vm21_vm3, %v1625_v19, 0.0 }
 0x11d   :  { %v979_v45 = vadd.f32 %v748_v40, %v94_v37  ;;  %v750_v46 = vpop.f32.mrb[17].mxu0  ;;  %v878_v48 = vpop.f32.mrb[17].mxu1  ;;  %v1011_v53 = vadd.f32 %v876_v44, %v126_v39  ;;  %1461 = vst.msk [vmem:[%s3470_s2 + $0x94] sm:$0xf] %vm1423_vm4, %v2060_v47  ;;  %v1626_v37 = vmul.f32 %v2731_v9, %v2731_v9  ;;  %v1689_v39 = vadd.f32 %v1688_v29, %v1687_v1 }
 0x11e   :  { %v2777_v49 = vld [vmem:[#allocation2 + $0x30] sm:$0xff]  ;;  %v751_v51 = vpop.f32.mrb[18].mxu0  ;;  %v879_v54 = vpop.f32.mrb[18].mxu1  ;;  %v1492_v40 = vadd.f32 %v1491_v30, %v1490_v32  ;;  %v1493_v46 = vsel %vm21_vm3, %v2731_v9, 0.0  ;;  %v1627_v47 = vmul.f32 %v2753_v25, %v2753_v25 }
 0x11f   :  { %v1141_v52 = vld [vmem:[#allocation2 + $0x130] sm:$0xff]  ;;  %v2029_v55 = vpack.c.bf16 %v2777_v49, %v2777_v49  ;;  %1044 = vst.msk [vmem:[#allocation2 + $0x40] sm:$0xff] %vm21_vm3, %v979_v45  ;;  %v980_v56 = vadd.f32 %v751_v51, %v95_v41  ;;  %v753_v57 = vpop.f32.mrb[19].mxu0  ;;  %v881_v59 = vpop.f32.mrb[19].mxu1  ;;  %1076 = vst.msk [vmem:[#allocation2 + $0x140] sm:$0xff] %vm21_vm3, %v1011_v53  ;;  %v1012_v0 = vadd.f32 %v879_v54, %v127_v58  ;;  %v1692_v9 = vsel %vm21_vm3, %v1626_v37, 0.0 }
 0x120   :  { %v2061_v61 = vpack.c.bf16 %v1141_v52, %v1141_v52  ;;  %v1691_v54 = vadd.f32 %v1690_v36, %v1689_v39  ;;  %v1495_v59 = vsel %vm21_vm3, %v2753_v25, 0.0  ;;  %v1628_v25 = vmul.f32 %v2759_v34, %v2759_v34  ;;  %v133_v37 = vld [vmem:[#allocation2 + $0x178] sm:$0xff] }
 0x121   :  { %v2786_v60 = vld [vmem:[#allocation2 + $0x38] sm:$0xff]  ;;  %1430 = vst.msk [vmem:[%s3470_s2 + $0x18] sm:$0xf] %vm1423_vm4, %v2029_v55 }
 0x122   :  { %v2030_v62 = vpack.c.bf16 %v2786_v60, %v2786_v60  ;;  %1045 = vst.msk [vmem:[#allocation2 + $0x48] sm:$0xff] %vm21_vm3, %v980_v56  ;;  %v1142_v3 = vld [vmem:[#allocation2 + $0x138] sm:$0xff]  ;;  %1077 = vst.msk [vmem:[#allocation2 + $0x148] sm:$0xff] %vm21_vm3, %v1012_v0  ;;  %v131_v0 = vld [vmem:[#allocation2 + $0x168] sm:$0xff]  ;;  %v1693_v8 = vadd.f32 %v1692_v9, %v1691_v54  ;;  %v1696_v34 = vsel %vm21_vm3, %v1628_v25, 0.0 }
 0x123   :  { %1462 = vst.msk [vmem:[%s3470_s2 + $0x98] sm:$0xf] %vm1423_vm4, %v2061_v61  ;;  %v2062_v6 = vpack.c.bf16 %v1142_v3, %v1142_v3  ;;  %v1494_v3 = vadd.f32 %v1493_v46, %v1492_v40  ;;  %v103_v9 = vld [vmem:[#allocation2 + $0x88] sm:$0xff] }
 0x124   :  { %1431 = vst.msk [vmem:[%s3470_s2 + $0x1c] sm:$0xf] %vm1423_vm4, %v2030_v62  ;;  %v756_v4 = vpop.f32.mrb[20].mxu0  ;;  %v884_v7 = vpop.f32.mrb[20].mxu1 }
 0x125   :  { %v981_v10 = vadd.f32 %v756_v4, %v96_v63  ;;  %v758_v11 = vpop.f32.mrb[21].mxu0  ;;  %v1013_v12 = vadd.f32 %v884_v7, %v128_v2  ;;  %v886_v13 = vpop.f32.mrb[21].mxu1  ;;  %1463 = vst.msk [vmem:[%s3470_s2 + $0x9c] sm:$0xf] %vm1423_vm4, %v2062_v6  ;;  %v1694_v6 = vsel %vm21_vm3, %v1627_v47, 0.0 }
 0x126   :  { %v2809_v15 = vld [vmem:[#allocation2 + $0x40] sm:$0xff]  ;;  %v759_v16 = vpop.f32.mrb[22].mxu0  ;;  %v887_v17 = vpop.f32.mrb[22].mxu1  ;;  %v100_v11 = vld [vmem:[#allocation2 + $0x70] sm:$0xff]  ;;  %v1695_v18 = vadd.f32 %v1694_v6, %v1693_v8 }
 0x127   :  { %v2031_v20 = vpack.c.bf16 %v2809_v15, %v2809_v15  ;;  %1046 = vst.msk [vmem:[#allocation2 + $0x50] sm:$0xff] %vm21_vm3, %v981_v10  ;;  %v982_v21 = vadd.f32 %v759_v16, %v97_v5  ;;  %v761_v22 = vpop.f32.mrb[23].mxu0  ;;  %v1143_v23 = vld [vmem:[#allocation2 + $0x140] sm:$0xff]  ;;  %1078 = vst.msk [vmem:[#allocation2 + $0x150] sm:$0xff] %vm21_vm3, %v1013_v12  ;;  %v889_v26 = vpop.f32.mrb[23].mxu1  ;;  %v1014_v42 = vadd.f32 %v887_v17, %v129_v24  ;;  %v132_v13 = vld [vmem:[#allocation2 + $0x170] sm:$0xff] }
 0x128   :  { %v2063_v28 = vpack.c.bf16 %v1143_v23, %v1143_v23  ;;  %v1496_v10 = vadd.f32 %v1495_v59, %v1494_v3  ;;  %v1629_v16 = vmul.f32 %v2777_v49, %v2777_v49  ;;  %v1499_v23 = vsel %vm21_vm3, %v2777_v49, 0.0 }
 0x129   :  { %v2823_v27 = vld [vmem:[#allocation2 + $0x48] sm:$0xff]  ;;  %1432 = vst.msk [vmem:[%s3470_s2 + $0x20] sm:$0xf] %vm1423_vm4, %v2031_v20  ;;  %v101_v20 = vld [vmem:[#allocation2 + $0x78] sm:$0xff]  ;;  %v1630_v49 = vmul.f32 %v2786_v60, %v2786_v60  ;;  %v1697_v39 = vadd.f32 %v1696_v34, %v1695_v18 }
 0x12a   :  { %v2032_v31 = vpack.c.bf16 %v2823_v27, %v2823_v27  ;;  %1047 = vst.msk [vmem:[#allocation2 + $0x58] sm:$0xff] %vm21_vm3, %v982_v21  ;;  %v1144_v38 = vld [vmem:[#allocation2 + $0x148] sm:$0xff]  ;;  %1079 = vst.msk [vmem:[#allocation2 + $0x158] sm:$0xff] %vm21_vm3, %v1014_v42  ;;  %v1498_v29 = vadd.f32 %v1497_v14, %v1496_v10  ;;  %v1698_v42 = vsel %vm21_vm3, %v1629_v16, 0.0 }
 0x12b   :  { %1464 = vst.msk [vmem:[%s3470_s2 + $0xa0] sm:$0xf] %vm1423_vm4, %v2063_v28  ;;  %v2064_v44 = vpack.c.bf16 %v1144_v38, %v1144_v38  ;;  %v1699_v47 = vadd.f32 %v1698_v42, %v1697_v39  ;;  %v135_v18 = vld [vmem:[#allocation2 + $0x188] sm:$0xff] }
 0x12c   :  { %1433 = vst.msk [vmem:[%s3470_s2 + $0x24] sm:$0xf] %vm1423_vm4, %v2032_v31  ;;  %v764_v41 = vpop.f32.mrb[24].mxu0  ;;  %v892_v45 = vpop.f32.mrb[24].mxu1  ;;  %v1500_v40 = vadd.f32 %v1499_v23, %v1498_v29 }
 0x12d   :  { %v983_v48 = vadd.f32 %v764_v41, %v98_v33  ;;  %v766_v51 = vpop.f32.mrb[25].mxu0  ;;  %v1015_v52 = vadd.f32 %v892_v45, %v130_v35  ;;  %v894_v53 = vpop.f32.mrb[25].mxu1  ;;  %1465 = vst.msk [vmem:[%s3470_s2 + $0xa4] sm:$0xf] %vm1423_vm4, %v2064_v44  ;;  %v1501_v44 = vsel %vm21_vm3, %v2786_v60, 0.0  ;;  %v1631_v45 = vmul.f32 %v2809_v15, %v2809_v15 }
 0x12e   :  { %v2854_v55 = vld [vmem:[#allocation2 + $0x50] sm:$0xff]  ;;  %v767_v56 = vpop.f32.mrb[26].mxu0  ;;  %v895_v58 = vpop.f32.mrb[26].mxu1  ;;  %v134_v51 = vld [vmem:[#allocation2 + $0x180] sm:$0xff]  ;;  %v1503_v53 = vsel %vm21_vm3, %v2809_v15, 0.0  ;;  %v1632_v15 = vmul.f32 %v2823_v27, %v2823_v27 }
 0x12f   :  { %v2860_v57 = vld [vmem:[#allocation2 + $0x150] sm:$0xff]  ;;  %v2033_v61 = vpack.c.bf16 %v2854_v55, %v2854_v55  ;;  %1048 = vst.msk [vmem:[#allocation2 + $0x60] sm:$0xff] %vm21_vm3, %v983_v48  ;;  %v984_v62 = vadd.f32 %v767_v56, %v99_v43  ;;  %v769_v63 = vpop.f32.mrb[27].mxu0  ;;  %1080 = vst.msk [vmem:[#allocation2 + $0x160] sm:$0xff] %vm21_vm3, %v1015_v52  ;;  %v897_v2 = vpop.f32.mrb[27].mxu1  ;;  %v1016_v12 = vadd.f32 %v895_v58, %v131_v0  ;;  %v102_v48 = vld [vmem:[#allocation2 + $0x80] sm:$0xff] }
 0x130   :  { %v2065_v5 = vpack.c.bf16 %v2860_v57, %v2860_v57  ;;  %v1700_v52 = vsel %vm21_vm3, %v1630_v49, 0.0  ;;  %v1502_v56 = vadd.f32 %v1501_v44, %v1500_v40  ;;  %v1507_v34 = vsel %vm21_vm3, %v2854_v55, 0.0 }
 0x131   :  { %v2869_v4 = vld [vmem:[#allocation2 + $0x58] sm:$0xff]  ;;  %1434 = vst.msk [vmem:[%s3470_s2 + $0x28] sm:$0xf] %vm1423_vm4, %v2033_v61 }
 0x132   :  { %v2034_v7 = vpack.c.bf16 %v2869_v4, %v2869_v4  ;;  %1049 = vst.msk [vmem:[#allocation2 + $0x68] sm:$0xff] %vm21_vm3, %v984_v62  ;;  %v2895_v17 = vld [vmem:[#allocation2 + $0x158] sm:$0xff]  ;;  %1081 = vst.msk [vmem:[#allocation2 + $0x168] sm:$0xff] %vm21_vm3, %v1016_v12  ;;  %v1702_v62 = vsel %vm21_vm3, %v1631_v45, 0.0  ;;  %v1504_v6 = vadd.f32 %v1503_v53, %v1502_v56  ;;  %v1633_v12 = vmul.f32 %v2854_v55, %v2854_v55 }
 0x133   :  { %1466 = vst.msk [vmem:[%s3470_s2 + $0xa8] sm:$0xf] %vm1423_vm4, %v2065_v5  ;;  %v2066_v21 = vpack.c.bf16 %v2895_v17, %v2895_v17  ;;  %v1701_v5 = vadd.f32 %v1700_v52, %v1699_v47  ;;  %v1634_v29 = vmul.f32 %v2869_v4, %v2869_v4 }
 0x134   :  { %1435 = vst.msk [vmem:[%s3470_s2 + $0x2c] sm:$0xf] %vm1423_vm4, %v2034_v7  ;;  %v772_v19 = vpop.f32.mrb[28].mxu0  ;;  %v900_v22 = vpop.f32.mrb[28].mxu1  ;;  %v1706_v55 = vsel %vm21_vm3, %v1633_v12, 0.0 }
 0x135   :  { %v985_v24 = vadd.f32 %v772_v19, %v100_v11  ;;  %v774_v26 = vpop.f32.mrb[29].mxu0  ;;  %v1017_v28 = vadd.f32 %v900_v22, %v132_v13  ;;  %v902_v50 = vpop.f32.mrb[29].mxu1  ;;  %1467 = vst.msk [vmem:[%s3470_s2 + $0xac] sm:$0xf] %vm1423_vm4, %v2066_v21  ;;  %v1505_v11 = vsel %vm21_vm3, %v2823_v27, 0.0  ;;  %v1704_v22 = vsel %vm21_vm3, %v1632_v15, 0.0 }
 0x136   :  { %v2903_v30 = vld [vmem:[#allocation2 + $0x60] sm:$0xff]  ;;  %v775_v31 = vpop.f32.mrb[30].mxu0  ;;  %v903_v33 = vpop.f32.mrb[30].mxu1  ;;  %v104_v26 = vld [vmem:[#allocation2 + $0x90] sm:$0xff] }
 0x137   :  { %v2909_v32 = vld [vmem:[#allocation2 + $0x160] sm:$0xff]  ;;  %v2035_v35 = vpack.c.bf16 %v2903_v30, %v2903_v30  ;;  %1050 = vst.msk [vmem:[#allocation2 + $0x70] sm:$0xff] %vm21_vm3, %v985_v24  ;;  %v986_v1 = vadd.f32 %v775_v31, %v101_v20  ;;  %v777_v36 = vpop.f32.mrb[31].mxu0  ;;  %1082 = vst.msk [vmem:[#allocation2 + $0x170] sm:$0xff] %vm21_vm3, %v1017_v28  ;;  %v905_v38 = vpop.f32.mrb[31].mxu1  ;;  %v1018_v60 = vadd.f32 %v903_v33, %v133_v37  ;;  %v136_v50 = vld [vmem:[#allocation2 + $0x190] sm:$0xff] }
 0x138   :  { %v2067_v43 = vpack.c.bf16 %v2909_v32, %v2909_v32  ;;  %v1703_v20 = vadd.f32 %v1702_v62, %v1701_v5  ;;  %v1506_v24 = vadd.f32 %v1505_v11, %v1504_v6  ;;  %v1509_v37 = vsel %vm21_vm3, %v2869_v4, 0.0  ;;  %v138_v6 = vld [vmem:[#allocation2 + $0x1a0] sm:$0xff] }
 0x139   :  { %v2918_v41 = vld [vmem:[#allocation2 + $0x68] sm:$0xff]  ;;  %1436 = vst.msk [vmem:[%s3470_s2 + $0x30] sm:$0xf] %vm1423_vm4, %v2035_v35  ;;  %v105_v35 = vld [vmem:[#allocation2 + $0x98] sm:$0xff]  ;;  %v1635_v38 = vmul.f32 %v2903_v30, %v2903_v30  ;;  %v1708_v4 = vsel %vm21_vm3, %v1634_v29, 0.0 }
 0x13a   :  { %v2036_v46 = vpack.c.bf16 %v2918_v41, %v2918_v41  ;;  %1051 = vst.msk [vmem:[#allocation2 + $0x78] sm:$0xff] %vm21_vm3, %v986_v1  ;;  %v2944_v54 = vld [vmem:[#allocation2 + $0x168] sm:$0xff]  ;;  %1083 = vst.msk [vmem:[#allocation2 + $0x178] sm:$0xff] %vm21_vm3, %v1018_v60  ;;  %v1705_v33 = vadd.f32 %v1704_v22, %v1703_v20  ;;  %v1508_v42 = vadd.f32 %v1507_v34, %v1506_v24 }
 0x13b   :  { %1468 = vst.msk [vmem:[%s3470_s2 + $0xb0] sm:$0xf] %vm1423_vm4, %v2067_v43  ;;  %v2068_v59 = vpack.c.bf16 %v2944_v54, %v2944_v54  ;;  %v1710_v15 = vsel %vm21_vm3, %v1635_v38, 0.0 }
 0x13c   :  { %1437 = vst.msk [vmem:[%s3470_s2 + $0x34] sm:$0xf] %vm1423_vm4, %v2036_v46  ;;  %v780_v58 = vpop.f32.mrb[32].mxu0  ;;  %v908_v61 = vpop.f32.mrb[32].mxu1  ;;  %v1707_v45 = vadd.f32 %v1706_v55, %v1705_v33 }
 0x13d   :  { %v987_v63 = vadd.f32 %v780_v58, %v102_v48  ;;  %v782_v0 = vpop.f32.mrb[33].mxu0  ;;  %v1019_v2 = vadd.f32 %v908_v61, %v134_v51  ;;  %v910_v3 = vpop.f32.mrb[33].mxu1  ;;  %1469 = vst.msk [vmem:[%s3470_s2 + $0xb4] sm:$0xf] %vm1423_vm4, %v2068_v59  ;;  %v1511_v51 = vsel %vm21_vm3, %v2903_v30, 0.0  ;;  %v137_v58 = vld [vmem:[#allocation2 + $0x198] sm:$0xff]  ;;  %v1510_v59 = vadd.f32 %v1509_v37, %v1508_v42 }
 0x13e   :  { %v2952_v25 = vld [vmem:[#allocation2 + $0x70] sm:$0xff]  ;;  %v783_v7 = vpop.f32.mrb[34].mxu0  ;;  %v911_v10 = vpop.f32.mrb[34].mxu1  ;;  %v1636_v30 = vmul.f32 %v2918_v41, %v2918_v41  ;;  %v1709_v0 = vadd.f32 %v1708_v4, %v1707_v45  ;;  %v106_v3 = vld [vmem:[#allocation2 + $0xa0] sm:$0xff] }
 0x13f   :  { %v2958_v8 = vld [vmem:[#allocation2 + $0x170] sm:$0xff]  ;;  %v2037_v13 = vpack.c.bf16 %v2952_v25, %v2952_v25  ;;  %1052 = vst.msk [vmem:[#allocation2 + $0x80] sm:$0xff] %vm21_vm3, %v987_v63  ;;  %v988_v14 = vadd.f32 %v783_v7, %v103_v9  ;;  %v785_v16 = vpop.f32.mrb[35].mxu0  ;;  %1084 = vst.msk [vmem:[#allocation2 + $0x180] sm:$0xff] %vm21_vm3, %v1019_v2  ;;  %v913_v19 = vpop.f32.mrb[35].mxu1  ;;  %v1020_v28 = vadd.f32 %v911_v10, %v135_v18  ;;  %v1513_v7 = vsel %vm21_vm3, %v2918_v41, 0.0 }
 0x140   :  { %v2069_v27 = vpack.c.bf16 %v2958_v8, %v2958_v8  ;;  %v1512_v2 = vadd.f32 %v1511_v51, %v1510_v59  ;;  %v1637_v10 = vmul.f32 %v2952_v25, %v2952_v25  ;;  %v1711_v12 = vadd.f32 %v1710_v15, %v1709_v0  ;;  %v141_v0 = vld [vmem:[#allocation2 + $0x1b8] sm:$0xff] }
 0x141   :  { %v2968_v21 = vld [vmem:[#allocation2 + $0x78] sm:$0xff]  ;;  %1438 = vst.msk [vmem:[%s3470_s2 + $0x38] sm:$0xf] %vm1423_vm4, %v2037_v13  ;;  %v1712_v41 = vsel %vm21_vm3, %v1636_v30, 0.0  ;;  %v1515_v19 = vsel %vm21_vm3, %v2952_v25, 0.0 }
 0x142   :  { %v2038_v23 = vpack.c.bf16 %v2968_v21, %v2968_v21  ;;  %1053 = vst.msk [vmem:[#allocation2 + $0x88] sm:$0xff] %vm21_vm3, %v988_v14  ;;  %v2993_v31 = vld [vmem:[#allocation2 + $0x178] sm:$0xff]  ;;  %1085 = vst.msk [vmem:[#allocation2 + $0x188] sm:$0xff] %vm21_vm3, %v1020_v28  ;;  %v107_v14 = vld [vmem:[#allocation2 + $0xa8] sm:$0xff]  ;;  %v1514_v24 = vadd.f32 %v1513_v7, %v1512_v2  ;;  %v1714_v29 = vsel %vm21_vm3, %v1637_v10, 0.0  ;;  %v1638_v25 = vmul.f32 %v2968_v21, %v2968_v21 }
 0x143   :  { %1470 = vst.msk [vmem:[%s3470_s2 + $0xb8] sm:$0xf] %vm1423_vm4, %v2069_v27  ;;  %v2070_v1 = vpack.c.bf16 %v2993_v31, %v2993_v31 }
 0x144   :  { %1439 = vst.msk [vmem:[%s3470_s2 + $0x3c] sm:$0xf] %vm1423_vm4, %v2038_v23  ;;  %v788_v49 = vpop.f32.mrb[36].mxu0  ;;  %v916_v36 = vpop.f32.mrb[36].mxu1  ;;  %v139_v23 = vld [vmem:[#allocation2 + $0x1a8] sm:$0xff] }
 0x145   :  { %v989_v39 = vadd.f32 %v788_v49, %v104_v26  ;;  %v790_v40 = vpop.f32.mrb[37].mxu0  ;;  %v1021_v43 = vadd.f32 %v916_v36, %v136_v50  ;;  %v918_v44 = vpop.f32.mrb[37].mxu1  ;;  %1471 = vst.msk [vmem:[%s3470_s2 + $0xbc] sm:$0xf] %vm1423_vm4, %v2070_v1  ;;  %v1713_v1 = vadd.f32 %v1712_v41, %v1711_v12  ;;  %v1516_v36 = vadd.f32 %v1515_v19, %v1514_v24 }
 0x146   :  { %v3002_v46 = vld [vmem:[#allocation2 + $0x80] sm:$0xff]  ;;  %v791_v47 = vpop.f32.mrb[38].mxu0  ;;  %v919_v60 = vpop.f32.mrb[38].mxu1  ;;  %v1517_v40 = vsel %vm21_vm3, %v2968_v21, 0.0  ;;  %v140_v21 = vld [vmem:[#allocation2 + $0x1b0] sm:$0xff] }
 0x147   :  { %v3008_v48 = vld [vmem:[#allocation2 + $0x180] sm:$0xff]  ;;  %v2039_v52 = vpack.c.bf16 %v3002_v46, %v3002_v46  ;;  %1054 = vst.msk [vmem:[#allocation2 + $0x90] sm:$0xff] %vm21_vm3, %v989_v39  ;;  %v990_v53 = vadd.f32 %v791_v47, %v105_v35  ;;  %v793_v56 = vpop.f32.mrb[39].mxu0  ;;  %1086 = vst.msk [vmem:[#allocation2 + $0x190] sm:$0xff] %vm21_vm3, %v1021_v43  ;;  %v921_v9 = vpop.f32.mrb[39].mxu1  ;;  %v1022_v5 = vadd.f32 %v919_v60, %v137_v58  ;;  %v108_v47 = vld [vmem:[#allocation2 + $0xb0] sm:$0xff] }
 0x148   :  { %v2071_v62 = vpack.c.bf16 %v3008_v48, %v3008_v48  ;;  %v1639_v43 = vmul.f32 %v3002_v46, %v3002_v46  ;;  %v1715_v45 = vadd.f32 %v1714_v29, %v1713_v1  ;;  %v1716_v60 = vsel %vm21_vm3, %v1638_v25, 0.0  ;;  %v109_v56 = vld [vmem:[#allocation2 + $0xb8] sm:$0xff]  ;;  %v142_v29 = vld [vmem:[#allocation2 + $0x1c0] sm:$0xff]  ;;  %v111_v1 = vld [vmem:[#allocation2 + $0xc8] sm:$0xff] }
 0x149   :  { %v3017_v61 = vld [vmem:[#allocation2 + $0x88] sm:$0xff]  ;;  %1440 = vst.msk [vmem:[%s3470_s2 + $0x40] sm:$0xf] %vm1423_vm4, %v2039_v52  ;;  %v1519_v4 = vsel %vm21_vm3, %v3002_v46, 0.0  ;;  %v1518_v52 = vadd.f32 %v1517_v40, %v1516_v36 }
 0x14a   :  { %v2040_v63 = vpack.c.bf16 %v3017_v61, %v3017_v61  ;;  %1055 = vst.msk [vmem:[#allocation2 + $0x98] sm:$0xff] %vm21_vm3, %v990_v53  ;;  %v3043_v11 = vld [vmem:[#allocation2 + $0x188] sm:$0xff]  ;;  %1087 = vst.msk [vmem:[#allocation2 + $0x198] sm:$0xff] %vm21_vm3, %v1022_v5  ;;  %v1718_v59 = vsel %vm21_vm3, %v1639_v43, 0.0  ;;  %v1717_v2 = vadd.f32 %v1716_v60, %v1715_v45  ;;  %v1521_v12 = vsel %vm21_vm3, %v3017_v61, 0.0 }
 0x14b   :  { %1472 = vst.msk [vmem:[%s3470_s2 + $0xc0] sm:$0xf] %vm1423_vm4, %v2071_v62  ;;  %v2072_v16 = vpack.c.bf16 %v3043_v11, %v3043_v11  ;;  %v1640_v62 = vmul.f32 %v3017_v61, %v3017_v61 }
 0x14c   :  { %1441 = vst.msk [vmem:[%s3470_s2 + $0x44] sm:$0xf] %vm1423_vm4, %v2040_v63  ;;  %v796_v13 = vpop.f32.mrb[40].mxu0  ;;  %v924_v18 = vpop.f32.mrb[40].mxu1  ;;  %v1719_v19 = vadd.f32 %v1718_v59, %v1717_v2 }
 0x14d   :  { %v991_v20 = vadd.f32 %v796_v13, %v106_v3  ;;  %v798_v27 = vpop.f32.mrb[41].mxu0  ;;  %v1023_v22 = vadd.f32 %v924_v18, %v138_v6  ;;  %v926_v34 = vpop.f32.mrb[41].mxu1  ;;  %1473 = vst.msk [vmem:[%s3470_s2 + $0xc4] sm:$0xf] %vm1423_vm4, %v2072_v16  ;;  %v1520_v3 = vadd.f32 %v1519_v4, %v1518_v52 }
 0x14e   :  { %v3051_v26 = vld [vmem:[#allocation2 + $0x90] sm:$0xff]  ;;  %v799_v28 = vpop.f32.mrb[42].mxu0  ;;  %v927_v55 = vpop.f32.mrb[42].mxu1  ;;  %v1720_v34 = vsel %vm21_vm3, %v1640_v62, 0.0 }
 0x14f   :  { %v3057_v50 = vld [vmem:[#allocation2 + $0x190] sm:$0xff]  ;;  %v2041_v33 = vpack.c.bf16 %v3051_v26, %v3051_v26  ;;  %1056 = vst.msk [vmem:[#allocation2 + $0xa0] sm:$0xff] %vm21_vm3, %v991_v20  ;;  %v992_v42 = vadd.f32 %v799_v28, %v107_v14  ;;  %v801_v49 = vpop.f32.mrb[43].mxu0  ;;  %1088 = vst.msk [vmem:[#allocation2 + $0x1a0] sm:$0xff] %vm21_vm3, %v1023_v22  ;;  %v929_v35 = vpop.f32.mrb[43].mxu1  ;;  %v1024_v39 = vadd.f32 %v927_v55, %v139_v23  ;;  %v1523_v61 = vsel %vm21_vm3, %v3051_v26, 0.0 }
 0x150   :  { %v2073_v38 = vpack.c.bf16 %v3057_v50, %v3057_v50  ;;  %v1641_v13 = vmul.f32 %v3051_v26, %v3051_v26  ;;  %v1522_v28 = vadd.f32 %v1521_v12, %v1520_v3  ;;  %v110_v55 = vld [vmem:[#allocation2 + $0xc0] sm:$0xff]  ;;  %v112_v12 = vld [vmem:[#allocation2 + $0xd0] sm:$0xff] }
 0x151   :  { %v3066_v37 = vld [vmem:[#allocation2 + $0x98] sm:$0xff]  ;;  %1442 = vst.msk [vmem:[%s3470_s2 + $0x48] sm:$0xf] %vm1423_vm4, %v2041_v33 }
 0x152   :  { %v2042_v44 = vpack.c.bf16 %v3066_v37, %v3066_v37  ;;  %1057 = vst.msk [vmem:[#allocation2 + $0xa8] sm:$0xff] %vm21_vm3, %v992_v42  ;;  %1089 = vst.msk [vmem:[#allocation2 + $0x1a8] sm:$0xff] %vm21_vm3, %v1024_v39  ;;  %v3093_v51 = vld [vmem:[#allocation2 + $0x198] sm:$0xff]  ;;  %v1722_v26 = vsel %vm21_vm3, %v1641_v13, 0.0  ;;  %v1642_v33 = vmul.f32 %v3066_v37, %v3066_v37  ;;  %v1721_v42 = vadd.f32 %v1720_v34, %v1719_v19  ;;  %v144_v13 = vld [vmem:[#allocation2 + $0x1d0] sm:$0xff] }
 0x153   :  { %1474 = vst.msk [vmem:[%s3470_s2 + $0xc8] sm:$0xf] %vm1423_vm4, %v2073_v38  ;;  %v2074_v9 = vpack.c.bf16 %v3093_v51, %v3093_v51  ;;  %v1524_v49 = vadd.f32 %v1523_v61, %v1522_v28  ;;  %v1525_v38 = vsel %vm21_vm3, %v3066_v37, 0.0 }
 0x154   :  { %1443 = vst.msk [vmem:[%s3470_s2 + $0x4c] sm:$0xf] %vm1423_vm4, %v2042_v44  ;;  %v804_v53 = vpop.f32.mrb[44].mxu0  ;;  %v932_v58 = vpop.f32.mrb[44].mxu1 }
 0x155   :  { %v993_v46 = vadd.f32 %v804_v53, %v108_v47  ;;  %v806_v15 = vpop.f32.mrb[45].mxu0  ;;  %v1025_v30 = vadd.f32 %v932_v58, %v140_v21  ;;  %v934_v63 = vpop.f32.mrb[45].mxu1  ;;  %1475 = vst.msk [vmem:[%s3470_s2 + $0xcc] sm:$0xf] %vm1423_vm4, %v2074_v9  ;;  %v143_v47 = vld [vmem:[#allocation2 + $0x1c8] sm:$0xff]  ;;  %v1723_v21 = vadd.f32 %v1722_v26, %v1721_v42 }
 0x156   :  { %v1123_v5 = vld [vmem:[#allocation2 + $0xa0] sm:$0xff]  ;;  %v807_v6 = vpop.f32.mrb[46].mxu0  ;;  %v935_v7 = vpop.f32.mrb[46].mxu1 }
 0x157   :  { %v3100_v10 = vld [vmem:[#allocation2 + $0x1a0] sm:$0xff]  ;;  %v2043_v14 = vpack.c.bf16 %v1123_v5, %v1123_v5  ;;  %1058 = vst.msk [vmem:[#allocation2 + $0xb0] sm:$0xff] %vm21_vm3, %v993_v46  ;;  %v994_v16 = vadd.f32 %v807_v6, %v109_v56  ;;  %v809_v18 = vpop.f32.mrb[47].mxu0  ;;  %1090 = vst.msk [vmem:[#allocation2 + $0x1b0] sm:$0xff] %vm21_vm3, %v1025_v30  ;;  %v937_v41 = vpop.f32.mrb[47].mxu1  ;;  %v1026_v27 = vadd.f32 %v935_v7, %v141_v0  ;;  %v1724_v56 = vsel %vm21_vm3, %v1642_v33, 0.0 }
 0x158   :  { %v2075_v22 = vpack.c.bf16 %v3100_v10, %v3100_v10  ;;  %v1643_v39 = vmul.f32 %v1123_v5, %v1123_v5  ;;  %v1527_v58 = vsel %vm21_vm3, %v1123_v5, 0.0  ;;  %v1526_v46 = vadd.f32 %v1525_v38, %v1524_v49 }
 0x159   :  { %v1124_v20 = vld [vmem:[#allocation2 + $0xa8] sm:$0xff]  ;;  %1444 = vst.msk [vmem:[%s3470_s2 + $0x50] sm:$0xf] %vm1423_vm4, %v2043_v14  ;;  %v1725_v6 = vadd.f32 %v1724_v56, %v1723_v21 }
 0x15a   :  { %v2044_v23 = vpack.c.bf16 %v1124_v20, %v1124_v20  ;;  %1059 = vst.msk [vmem:[#allocation2 + $0xb8] sm:$0xff] %vm21_vm3, %v994_v16  ;;  %v3122_v24 = vld [vmem:[#allocation2 + $0x1a8] sm:$0xff]  ;;  %1091 = vst.msk [vmem:[#allocation2 + $0x1b8] sm:$0xff] %vm21_vm3, %v1026_v27  ;;  %v1726_v0 = vsel %vm21_vm3, %v1643_v39, 0.0  ;;  %v1644_v2 = vmul.f32 %v1124_v20, %v1124_v20  ;;  %v1528_v7 = vadd.f32 %v1527_v58, %v1526_v46  ;;  %v113_v27 = vld [vmem:[#allocation2 + $0xd8] sm:$0xff] }
 0x15b   :  { %v2076_v25 = vpack.c.bf16 %v3122_v24, %v3122_v24  ;;  %1476 = vst.msk [vmem:[%s3470_s2 + $0xd0] sm:$0xf] %vm1423_vm4, %v2075_v22  ;;  %v1529_v16 = vsel %vm21_vm3, %v1124_v20, 0.0  ;;  %v1727_v41 = vadd.f32 %v1726_v0, %v1725_v6 }
 0x15c   :  { %1445 = vst.msk [vmem:[%s3470_s2 + $0x54] sm:$0xf] %vm1423_vm4, %v2044_v23  ;;  %v812_v35 = vpop.f32.mrb[48].mxu0  ;;  %v940_v36 = vpop.f32.mrb[48].mxu1  ;;  %v1728_v34 = vsel %vm21_vm3, %v1644_v2, 0.0 }
 0x15d   :  { %1477 = vst.msk [vmem:[%s3470_s2 + $0xd4] sm:$0xf] %vm1423_vm4, %v2076_v25  ;;  %v995_v40 = vadd.f32 %v812_v35, %v110_v55  ;;  %v814_v43 = vpop.f32.mrb[49].mxu0  ;;  %v1027_v44 = vadd.f32 %v940_v36, %v142_v29  ;;  %v942_v45 = vpop.f32.mrb[49].mxu1  ;;  %v145_v29 = vld [vmem:[#allocation2 + $0x1d8] sm:$0xff]  ;;  %v1530_v25 = vadd.f32 %v1529_v16, %v1528_v7 }
 0x15e   :  { %v1125_v60 = vld [vmem:[#allocation2 + $0xb0] sm:$0xff]  ;;  %v815_v4 = vpop.f32.mrb[50].mxu0  ;;  %v943_v52 = vpop.f32.mrb[50].mxu1  ;;  %v1729_v43 = vadd.f32 %v1728_v34, %v1727_v41 }
 0x15f   :  { %v3144_v53 = vld [vmem:[#allocation2 + $0x1b0] sm:$0xff]  ;;  %v2045_v9 = vpack.c.bf16 %v1125_v60, %v1125_v60  ;;  %1060 = vst.msk [vmem:[#allocation2 + $0xc0] sm:$0xff] %vm21_vm3, %v995_v40  ;;  %v996_v37 = vadd.f32 %v815_v4, %v111_v1  ;;  %v817_v59 = vpop.f32.mrb[51].mxu0  ;;  %1092 = vst.msk [vmem:[#allocation2 + $0x1c0] sm:$0xff] %vm21_vm3, %v1027_v44  ;;  %v945_v62 = vpop.f32.mrb[51].mxu1  ;;  %v1028_v30 = vadd.f32 %v943_v52, %v143_v47  ;;  %v1531_v61 = vsel %vm21_vm3, %v1125_v60, 0.0 }
 0x160   :  { %v2077_v63 = vpack.c.bf16 %v3144_v53, %v3144_v53  ;;  %v1645_v18 = vmul.f32 %v1125_v60, %v1125_v60  ;;  %v1532_v44 = vadd.f32 %v1531_v61, %v1530_v25 }
 0x161   :  { %v1126_v15 = vld [vmem:[#allocation2 + $0xb8] sm:$0xff]  ;;  %1446 = vst.msk [vmem:[%s3470_s2 + $0x58] sm:$0xf] %vm1423_vm4, %v2045_v9  ;;  %v114_v9 = vld [vmem:[#allocation2 + $0xe0] sm:$0xff] }
 0x162   :  { %v2046_v3 = vpack.c.bf16 %v1126_v15, %v1126_v15  ;;  %1061 = vst.msk [vmem:[#allocation2 + $0xc8] sm:$0xff] %vm21_vm3, %v996_v37  ;;  %v3158_v5 = vld [vmem:[#allocation2 + $0x1b8] sm:$0xff]  ;;  %1093 = vst.msk [vmem:[#allocation2 + $0x1c8] sm:$0xff] %vm21_vm3, %v1028_v30  ;;  %v1730_v35 = vsel %vm21_vm3, %v1645_v18, 0.0  ;;  %v1646_v1 = vmul.f32 %v1126_v15, %v1126_v15  ;;  %v1533_v60 = vsel %vm21_vm3, %v1126_v15, 0.0  ;;  %v146_v37 = vld [vmem:[#allocation2 + $0x1e0] sm:$0xff] }
 0x163   :  { %v2078_v14 = vpack.c.bf16 %v3158_v5, %v3158_v5  ;;  %1478 = vst.msk [vmem:[%s3470_s2 + $0xd8] sm:$0xf] %vm1423_vm4, %v2077_v63  ;;  %v1731_v58 = vadd.f32 %v1730_v35, %v1729_v43  ;;  %v1534_v15 = vadd.f32 %v1533_v60, %v1532_v44  ;;  %v115_v63 = vld [vmem:[#allocation2 + $0xe8] sm:$0xff]  ;;  %v148_v43 = vld [vmem:[#allocation2 + $0x1f0] sm:$0xff] }
 0x164   :  { %1447 = vst.msk [vmem:[%s3470_s2 + $0x5c] sm:$0xf] %vm1423_vm4, %v2046_v3  ;;  %v820_v19 = vpop.f32.mrb[52].mxu0  ;;  %v948_v22 = vpop.f32.mrb[52].mxu1  ;;  %v1732_v62 = vsel %vm21_vm3, %v1646_v1, 0.0 }
 0x165   :  { %1479 = vst.msk [vmem:[%s3470_s2 + $0xdc] sm:$0xf] %vm1423_vm4, %v2078_v14  ;;  %v997_v20 = vadd.f32 %v820_v19, %v112_v12  ;;  %v822_v23 = vpop.f32.mrb[53].mxu0  ;;  %v1029_v28 = vadd.f32 %v948_v22, %v144_v13  ;;  %v950_v55 = vpop.f32.mrb[53].mxu1  ;;  %v147_v14 = vld [vmem:[#allocation2 + $0x1e8] sm:$0xff]  ;;  %v1733_v16 = vadd.f32 %v1732_v62, %v1731_v58 }
 0x166   :  { %v1127_v26 = vld [vmem:[#allocation2 + $0xc0] sm:$0xff]  ;;  %v823_v33 = vpop.f32.mrb[54].mxu0  ;;  %v951_v42 = vpop.f32.mrb[54].mxu1 }
 0x167   :  { %v3178_v49 = vld [vmem:[#allocation2 + $0x1c0] sm:$0xff]  ;;  %v2047_v36 = vpack.c.bf16 %v1127_v26, %v1127_v26  ;;  %1062 = vst.msk [vmem:[#allocation2 + $0xd0] sm:$0xff] %vm21_vm3, %v997_v20  ;;  %v998_v38 = vadd.f32 %v823_v33, %v113_v27  ;;  %v825_v39 = vpop.f32.mrb[55].mxu0  ;;  %1094 = vst.msk [vmem:[#allocation2 + $0x1d0] sm:$0xff] %vm21_vm3, %v1029_v28  ;;  %v953_v40 = vpop.f32.mrb[55].mxu1  ;;  %v1030_v47 = vadd.f32 %v951_v42, %v145_v29  ;;  %v1535_v46 = vsel %vm21_vm3, %v1127_v26, 0.0 }
 0x168   :  { %v2079_v21 = vpack.c.bf16 %v3178_v49, %v3178_v49  ;;  %v1647_v4 = vmul.f32 %v1127_v26, %v1127_v26  ;;  %v1536_v18 = vadd.f32 %v1535_v46, %v1534_v15  ;;  %v116_v40 = vld [vmem:[#allocation2 + $0xf0] sm:$0xff]  ;;  %v149_v46 = vld [vmem:[#allocation2 + $0x1f8] sm:$0xff] }
 0x169   :  { %v1128_v45 = vld [vmem:[#allocation2 + $0xc8] sm:$0xff]  ;;  %1448 = vst.msk [vmem:[%s3470_s2 + $0x60] sm:$0xf] %vm1423_vm4, %v2047_v36 }
 0x16a   :  { %v2048_v52 = vpack.c.bf16 %v1128_v45, %v1128_v45  ;;  %1063 = vst.msk [vmem:[#allocation2 + $0xd8] sm:$0xff] %vm21_vm3, %v998_v38  ;;  %v3191_v56 = vld [vmem:[#allocation2 + $0x1c8] sm:$0xff]  ;;  %1095 = vst.msk [vmem:[#allocation2 + $0x1d8] sm:$0xff] %vm21_vm3, %v1030_v47  ;;  %v1734_v2 = vsel %vm21_vm3, %v1647_v4, 0.0  ;;  %v1648_v3 = vmul.f32 %v1128_v45, %v1128_v45  ;;  %v1537_v34 = vsel %vm21_vm3, %v1128_v45, 0.0  ;;  %v117_v4 = vld [vmem:[#allocation2 + $0xf8] sm:$0xff] }
 0x16b   :  { %v2080_v59 = vpack.c.bf16 %v3191_v56, %v3191_v56  ;;  %1480 = vst.msk [vmem:[%s3470_s2 + $0xe0] sm:$0xf] %vm1423_vm4, %v2079_v21  ;;  %v1735_v29 = vadd.f32 %v1734_v2, %v1733_v16  ;;  %v1538_v38 = vadd.f32 %v1537_v34, %v1536_v18 }
 0x16c   :  { %1449 = vst.msk [vmem:[%s3470_s2 + $0x64] sm:$0xf] %vm1423_vm4, %v2048_v52  ;;  %v828_v30 = vpop.f32.mrb[56].mxu0  ;;  %v956_v0 = vpop.f32.mrb[56].mxu1  ;;  %v1736_v42 = vsel %vm21_vm3, %v1648_v3, 0.0 }
 0x16d   :  { %1481 = vst.msk [vmem:[%s3470_s2 + $0xe4] sm:$0xf] %vm1423_vm4, %v2080_v59  ;;  %v999_v6 = vadd.f32 %v828_v30, %v114_v9  ;;  %v830_v7 = vpop.f32.mrb[57].mxu0  ;;  %v1031_v12 = vadd.f32 %v956_v0, %v146_v37  ;;  %v958_v13 = vpop.f32.mrb[57].mxu1  ;;  %v1737_v47 = vadd.f32 %v1736_v42, %v1735_v29 }
 0x16e   :  { %v1129_v41 = vld [vmem:[#allocation2 + $0xd0] sm:$0xff]  ;;  %v831_v19 = vpop.f32.mrb[58].mxu0  ;;  %v959_v27 = vpop.f32.mrb[58].mxu1 }
 0x16f   :  { %v3211_v22 = vld [vmem:[#allocation2 + $0x1d0] sm:$0xff]  ;;  %v2049_v61 = vpack.c.bf16 %v1129_v41, %v1129_v41  ;;  %v1649_v20 = vmul.f32 %v1129_v41, %v1129_v41  ;;  %1064 = vst.msk [vmem:[#allocation2 + $0xe0] sm:$0xff] %vm21_vm3, %v999_v6  ;;  %v1000_v23 = vadd.f32 %v831_v19, %v115_v63  ;;  %v833_v28 = vpop.f32.mrb[59].mxu0  ;;  %1096 = vst.msk [vmem:[#allocation2 + $0x1e0] sm:$0xff] %vm21_vm3, %v1031_v12  ;;  %v961_v55 = vpop.f32.mrb[59].mxu1  ;;  %v1539_v35 = vsel %vm21_vm3, %v1129_v41, 0.0 }
 0x170   :  { %v1032_v26 = vadd.f32 %v959_v27, %v147_v14  ;;  %v2081_v33 = vpack.c.bf16 %v3211_v22, %v3211_v22  ;;  %v1540_v21 = vadd.f32 %v1539_v35, %v1538_v38 }
 0x171   :  { %v1130_v25 = vld [vmem:[#allocation2 + $0xd8] sm:$0xff]  ;;  %1450 = vst.msk [vmem:[%s3470_s2 + $0x68] sm:$0xf] %vm1423_vm4, %v2049_v61  ;;  %v1738_v45 = vsel %vm21_vm3, %v1649_v20, 0.0 }
 0x172   :  { %v2050_v1 = vpack.c.bf16 %v1130_v25, %v1130_v25  ;;  %1065 = vst.msk [vmem:[#allocation2 + $0xe8] sm:$0xff] %vm21_vm3, %v1000_v23  ;;  %v3225_v36 = vld [vmem:[#allocation2 + $0x1d8] sm:$0xff]  ;;  %v1650_v39 = vmul.f32 %v1130_v25, %v1130_v25  ;;  %1097 = vst.msk [vmem:[#allocation2 + $0x1e8] sm:$0xff] %vm21_vm3, %v1032_v26  ;;  %v1541_v58 = vsel %vm21_vm3, %v1130_v25, 0.0  ;;  %v1739_v15 = vadd.f32 %v1738_v45, %v1737_v47 }
 0x173   :  { %v2082_v44 = vpack.c.bf16 %v3225_v36, %v3225_v36  ;;  %1482 = vst.msk [vmem:[%s3470_s2 + $0xe8] sm:$0xf] %vm1423_vm4, %v2081_v33  ;;  %v1542_v18 = vadd.f32 %v1541_v58, %v1540_v21 }
 0x174   :  { %1451 = vst.msk [vmem:[%s3470_s2 + $0x6c] sm:$0xf] %vm1423_vm4, %v2050_v1  ;;  %v836_v60 = vpop.f32.mrb[60].mxu0  ;;  %v964_v52 = vpop.f32.mrb[60].mxu1  ;;  %v1740_v30 = vsel %vm21_vm3, %v1650_v39, 0.0 }
 0x175   :  { %1483 = vst.msk [vmem:[%s3470_s2 + $0xec] sm:$0xf] %vm1423_vm4, %v2082_v44  ;;  %v1001_v9 = vadd.f32 %v836_v60, %v116_v40  ;;  %v838_v37 = vpop.f32.mrb[61].mxu0  ;;  %v1033_v59 = vadd.f32 %v964_v52, %v148_v43  ;;  %v966_v62 = vpop.f32.mrb[61].mxu1  ;;  %v1741_v28 = vadd.f32 %v1740_v30, %v1739_v15  ;;  %v2218_v44 = vld [vmem:[#allocation2 + $0x100] sm:$0xff]  ;;  %v2219_v30 = vld [vmem:[#allocation2 + $0x108] sm:$0xff] }
 0x176   :  { %v1131_v63 = vld [vmem:[#allocation2 + $0xe0] sm:$0xff]  ;;  %v839_v0 = vpop.f32.mrb[62].mxu0  ;;  %v967_v2 = vpop.f32.mrb[62].mxu1  ;;  %v1655_v45 = vmul.f32 %v2218_v44, %v2218_v44  ;;  %v1551_v15 = vsel %vm21_vm3, %v2218_v44, 0.0 }
 0x177   :  { %v3245_v3 = vld [vmem:[#allocation2 + $0x1e0] sm:$0xff]  ;;  %v2051_v6 = vpack.c.bf16 %v1131_v63, %v1131_v63  ;;  %v1543_v7 = vsel %vm21_vm3, %v1131_v63, 0.0  ;;  %v1651_v12 = vmul.f32 %v1131_v63, %v1131_v63  ;;  %1066 = vst.msk [vmem:[#allocation2 + $0xf0] sm:$0xff] %vm21_vm3, %v1001_v9  ;;  %v1002_v13 = vadd.f32 %v839_v0, %v117_v4  ;;  %v841_v14 = vpop.f32.mrb[63].mxu0  ;;  %1098 = vst.msk [vmem:[#allocation2 + $0x1f0] sm:$0xff] %vm21_vm3, %v1033_v59  ;;  %v969_v16 = vpop.f32.mrb[63].mxu1 }
 0x178   :  { %v1034_v19 = vadd.f32 %v967_v2, %v149_v46  ;;  %v2083_v27 = vpack.c.bf16 %v3245_v3, %v3245_v3  ;;  %v1544_v55 = vadd.f32 %v1543_v7, %v1542_v18  ;;  %v1656_v63 = vmul.f32 %v2219_v30, %v2219_v30 }
 0x179   :  { %v1132_v41 = vld [vmem:[#allocation2 + $0xe8] sm:$0xff]  ;;  %1452 = vst.msk [vmem:[%s3470_s2 + $0x70] sm:$0xf] %vm1423_vm4, %v2051_v6  ;;  %v1742_v34 = vsel %vm21_vm3, %v1651_v12, 0.0  ;;  %v1750_v7 = vsel %vm21_vm3, %v1655_v45, 0.0  ;;  %v1553_v12 = vsel %vm21_vm3, %v2219_v30, 0.0 }
 0x17a   :  { %v2052_v61 = vpack.c.bf16 %v1132_v41, %v1132_v41  ;;  %v1652_v20 = vmul.f32 %v1132_v41, %v1132_v41  ;;  %1067 = vst.msk [vmem:[#allocation2 + $0xf8] sm:$0xff] %vm21_vm3, %v1002_v13  ;;  %v3258_v23 = vld [vmem:[#allocation2 + $0x1e8] sm:$0xff]  ;;  %1099 = vst.msk [vmem:[#allocation2 + $0x1f8] sm:$0xff] %vm21_vm3, %v1034_v19  ;;  %v1545_v25 = vsel %vm21_vm3, %v1132_v41, 0.0  ;;  %v1743_v26 = vadd.f32 %v1742_v34, %v1741_v28  ;;  %v2220_v13 = vld [vmem:[#allocation2 + $0x110] sm:$0xff] }
 0x17b   :  { %v2084_v29 = vpack.c.bf16 %v3258_v23, %v3258_v23  ;;  %1484 = vst.msk [vmem:[%s3470_s2 + $0xf0] sm:$0xf] %vm1423_vm4, %v2083_v27  ;;  %v1546_v42 = vadd.f32 %v1545_v25, %v1544_v55  ;;  %v1657_v14 = vmul.f32 %v2220_v13, %v2220_v13  ;;  %v1752_v41 = vsel %vm21_vm3, %v1656_v63, 0.0  ;;  %v2221_v27 = vld [vmem:[#allocation2 + $0x118] sm:$0xff]  ;;  %v2226_v63 = vld [vmem:[#allocation2 + $0x140] sm:$0xff] }
 0x17c   :  { %1453 = vst.msk [vmem:[%s3470_s2 + $0x74] sm:$0xf] %vm1423_vm4, %v2052_v61  ;;  %v1744_v33 = vsel %vm21_vm3, %v1652_v20, 0.0  ;;  %v1555_v19 = vsel %vm21_vm3, %v2220_v13, 0.0  ;;  %v1658_v34 = vmul.f32 %v2221_v27, %v2221_v27  ;;  %v1557_v55 = vsel %vm21_vm3, %v2221_v27, 0.0  ;;  %v2227_v13 = vld [vmem:[#allocation2 + $0x148] sm:$0xff] }
 0x17d   :  { %1485 = vst.msk [vmem:[%s3470_s2 + $0xf4] sm:$0xf] %vm1423_vm4, %v2084_v29  ;;  %v1745_v47 = vadd.f32 %v1744_v33, %v1743_v26  ;;  %v1754_v28 = vsel %vm21_vm3, %v1657_v14, 0.0  ;;  %v2222_v29 = vld [vmem:[#allocation2 + $0x120] sm:$0xff]  ;;  %v1664_v14 = vmul.f32 %v2227_v13, %v2227_v13  ;;  %v1665_v27 = vmul.f32 %v2860_v57, %v2860_v57 }
 0x17e   :  { %v1133_v35 = vld [vmem:[#allocation2 + $0xf0] sm:$0xff]  ;;  %v1659_v25 = vmul.f32 %v2222_v29, %v2222_v29  ;;  %v1667_v57 = vmul.f32 %v2909_v32, %v2909_v32 }
 0x17f   :  { %v3277_v1 = vld [vmem:[#allocation2 + $0x1f0] sm:$0xff]  ;;  %v2053_v38 = vpack.c.bf16 %v1133_v35, %v1133_v35  ;;  %v1547_v39 = vsel %vm21_vm3, %v1133_v35, 0.0  ;;  %v1653_v40 = vmul.f32 %v1133_v35, %v1133_v35  ;;  %v1559_v35 = vsel %vm21_vm3, %v2222_v29, 0.0 }
 0x180   :  { %v2085_v43 = vpack.c.bf16 %v3277_v1, %v3277_v1  ;;  %v1548_v21 = vadd.f32 %v1547_v39, %v1546_v42  ;;  %v1756_v42 = vsel %vm21_vm3, %v1658_v34, 0.0  ;;  %v1758_v44 = vsel %vm21_vm3, %v1659_v25, 0.0 }
 0x181   :  { %v1134_v60 = vld [vmem:[#allocation2 + $0xf8] sm:$0xff]  ;;  %1454 = vst.msk [vmem:[%s3470_s2 + $0x78] sm:$0xf] %vm1423_vm4, %v2053_v38  ;;  %v1746_v4 = vsel %vm21_vm3, %v1653_v40, 0.0  ;;  %v2223_v38 = vld [vmem:[#allocation2 + $0x128] sm:$0xff]  ;;  %v1666_v29 = vmul.f32 %v2895_v17, %v2895_v17 }
 0x182   :  { %v2054_v52 = vpack.c.bf16 %v1134_v60, %v1134_v60  ;;  %v1549_v58 = vsel %vm21_vm3, %v1134_v60, 0.0  ;;  %v1654_v9 = vmul.f32 %v1134_v60, %v1134_v60  ;;  %v3288_v37 = vld [vmem:[#allocation2 + $0x1f8] sm:$0xff]  ;;  %1486 = vst.msk [vmem:[%s3470_s2 + $0xf8] sm:$0xf] %vm1423_vm4, %v2085_v43  ;;  %v1747_v59 = vadd.f32 %v1746_v4, %v1745_v47  ;;  %v2224_v47 = vld [vmem:[#allocation2 + $0x130] sm:$0xff] }
 0x183   :  { %v1550_v62 = vadd.f32 %v1549_v58, %v1548_v21  ;;  %v2086_v46 = vpack.c.bf16 %v3288_v37, %v3288_v37  ;;  %v1660_v39 = vmul.f32 %v2223_v38, %v2223_v38  ;;  %v1561_v45 = vsel %vm21_vm3, %v2223_v38, 0.0 }
 0x184   :  { %1455 = vst.msk [vmem:[%s3470_s2 + $0x7c] sm:$0xf] %vm1423_vm4, %v2054_v52  ;;  %v1748_v0 = vsel %vm21_vm3, %v1654_v9, 0.0  ;;  %v1661_v21 = vmul.f32 %v2224_v47, %v2224_v47  ;;  %v1563_v58 = vsel %vm21_vm3, %v2224_v47, 0.0  ;;  %v2225_v9 = vld [vmem:[#allocation2 + $0x138] sm:$0xff]  ;;  %v1774_v47 = vsel %vm21_vm3, %v1667_v57, 0.0 }
 0x185   :  { %v1552_v2 = vadd.f32 %v1551_v15, %v1550_v62  ;;  %v1749_v6 = vadd.f32 %v1748_v0, %v1747_v59  ;;  %1487 = vst.msk [vmem:[%s3470_s2 + $0xfc] sm:$0xf] %vm1423_vm4, %v2086_v46  ;;  %v1760_v52 = vsel %vm21_vm3, %v1660_v39, 0.0  ;;  %v1662_v59 = vmul.f32 %v2225_v9, %v2225_v9  ;;  %s2280_s2 = smov [#allocation3]  }
 0x186   :  { %v1762_v15 = vsel %vm21_vm3, %v1661_v21, 0.0  ;;  %v1565_v30 = vsel %vm21_vm3, %v2225_v9, 0.0  ;;  %v1663_v0 = vmul.f32 %v2226_v63, %v2226_v63  ;;  %v1772_v39 = vsel %vm21_vm3, %v1666_v29, 0.0  ;;  %s1829_s16 = sshll.u32 %s2280_s2, 4  ;;  %s1830_s16 = int_to_ptr.vmem [resolvable:$true] %s1829_s16 }
 0x187   :  { %v1554_v16 = vadd.f32 %v1553_v12, %v1552_v2  ;;  %v1751_v18 = vadd.f32 %v1750_v7, %v1749_v6  ;;  %v1764_v7 = vsel %vm21_vm3, %v1662_v59, 0.0  ;;  %v1567_v12 = vsel %vm21_vm3, %v2226_v63, 0.0  ;;  %s2229_s19 = scalar_lea.vmem %s1830_s16, 16  ;;  %s2233_s20 = scalar_lea.vmem %s1830_s16, 32 }
 0x188   :  { %v1669_v21 = vmul.f32 %v2958_v8, %v2958_v8  ;;  %p2230_p0 = scmp.ne.s32.totalorder %s1830_s16, %s2229_s19  ;;  %p2234_p1 = scmp.lt.s32.totalorder %s1830_s16, %s1830_s16 }
 0x189   :  { %v1556_v61 = vadd.f32 %v1555_v19, %v1554_v16  ;;  %v1753_v20 = vadd.f32 %v1752_v41, %v1751_v18  ;;  %v1766_v41 = vsel %vm21_vm3, %v1663_v0, 0.0  ;;  %v1569_v19 = vsel %vm21_vm3, %v2227_v13, 0.0  ;;  %p2235_p2 = scmp.lt.s32.totalorder %s2233_s20, %s2229_s19 }
 0x18a   :  { %v1583_v0 = vsel %vm21_vm3, %v3008_v48, 0.0 }
 0x18b   :  { %v1558_v26 = vadd.f32 %v1557_v55, %v1556_v61  ;;  %v1755_v33 = vadd.f32 %v1754_v28, %v1753_v20  ;;  %v1768_v20 = vsel %vm21_vm3, %v1664_v14, 0.0  ;;  %v2228_v28 = vld [vmem:[#allocation2 + $0x150] sm:$0xff]  ;;  %p2236_p3 = por %p2235_p2, %p2234_p1 }
 0x18c   :  { %v1571_v55 = vsel %vm21_vm3, %v2228_v28, 0.0  ;;  %v1676_v28 = vmul.f32 %v3122_v24, %v3122_v24 }
 0x18d   :  { %v1560_v40 = vadd.f32 %v1559_v35, %v1558_v26  ;;  %v1757_v43 = vadd.f32 %v1756_v42, %v1755_v33  ;;  %v1770_v33 = vsel %vm21_vm3, %v1665_v27, 0.0  ;;  %v1573_v42 = vsel %vm21_vm3, %v2895_v17, 0.0  ;;  %p2237_p4 = pnand %p2236_p3, %p2230_p0 }
 0x18e   :  { %v1577_v17 = vsel %vm21_vm3, %v2944_v54, 0.0  ;;  %v1675_v27 = vmul.f32 %v3100_v10, %v3100_v10 }
 0x18f   :  { %v1562_v60 = vadd.f32 %v1561_v45, %v1560_v40  ;;  %v1759_v4 = vadd.f32 %v1758_v44, %v1757_v43  ;;  %v1575_v40 = vsel %vm21_vm3, %v2909_v32, 0.0  ;;  %v1668_v43 = vmul.f32 %v2944_v54, %v2944_v54 }
 0x190   :  { %v1579_v32 = vsel %vm21_vm3, %v2958_v8, 0.0  ;;  %v1581_v54 = vsel %vm21_vm3, %v2993_v31, 0.0  ;;  %v1672_v8 = vmul.f32 %v3043_v11, %v3043_v11 }
 0x191   :  { %v1564_v62 = vadd.f32 %v1563_v58, %v1562_v60  ;;  %v1761_v46 = vadd.f32 %v1760_v52, %v1759_v4  ;;  %v1776_v52 = vsel %vm21_vm3, %v1668_v43, 0.0  ;;  %v1670_v58 = vmul.f32 %v2993_v31, %v2993_v31 }
 0x192   :  { %v1673_v31 = vmul.f32 %v3057_v50, %v3057_v50  ;;  %v1679_v43 = vmul.f32 %v3178_v49, %v3178_v49 }
 0x193   :  { %v1763_v2 = vadd.f32 %v1762_v15, %v1761_v46  ;;  %v1566_v6 = vadd.f32 %v1565_v30, %v1564_v62  ;;  %v1778_v62 = vsel %vm21_vm3, %v1669_v21, 0.0  ;;  %v1671_v46 = vmul.f32 %v3008_v48, %v3008_v48 }
 0x194   :  { %v1780_v63 = vsel %vm21_vm3, %v1670_v58, 0.0  ;;  %v1784_v48 = vsel %vm21_vm3, %v1672_v8, 0.0 }
 0x195   :  { %v1568_v16 = vadd.f32 %v1567_v12, %v1566_v6  ;;  %v1765_v18 = vadd.f32 %v1764_v7, %v1763_v2  ;;  %v1585_v7 = vsel %vm21_vm3, %v3043_v11, 0.0  ;;  %v1782_v12 = vsel %vm21_vm3, %v1671_v46, 0.0 }
 0x196   :  { %v1589_v11 = vsel %vm21_vm3, %v3093_v51, 0.0 }
 0x197   :  { %v1570_v34 = vadd.f32 %v1569_v19, %v1568_v16  ;;  %v1767_v61 = vadd.f32 %v1766_v41, %v1765_v18  ;;  %v1587_v16 = vsel %vm21_vm3, %v3057_v50, 0.0  ;;  %v1674_v18 = vmul.f32 %v3093_v51, %v3093_v51 }
 0x198   :  { %v1591_v50 = vsel %vm21_vm3, %v3100_v10, 0.0  ;;  %v1593_v51 = vsel %vm21_vm3, %v3122_v24, 0.0  ;;  %v1595_v10 = vsel %vm21_vm3, %v3144_v53, 0.0  ;;  %v1597_v24 = vsel %vm21_vm3, %v3158_v5, 0.0 }
 0x199   :  { %v1572_v25 = vadd.f32 %v1571_v55, %v1570_v34  ;;  %v1769_v26 = vadd.f32 %v1768_v20, %v1767_v61  ;;  %v1786_v34 = vsel %vm21_vm3, %v1673_v31, 0.0  ;;  %v1788_v55 = vsel %vm21_vm3, %v1674_v18, 0.0 }
 0x19a   :  { %v1609_v31 = vsel %vm21_vm3, %v3258_v23, 0.0 }
 0x19b   :  { %v1574_v35 = vadd.f32 %v1573_v42, %v1572_v25  ;;  %v1771_v38 = vadd.f32 %v1770_v33, %v1769_v26  ;;  %v1677_v26 = vmul.f32 %v3144_v53, %v3144_v53  ;;  %v1790_v33 = vsel %vm21_vm3, %v1675_v27, 0.0 }
 0x19c   :  { %v1599_v53 = vsel %vm21_vm3, %v3178_v49, 0.0  ;;  %v1603_v49 = vsel %vm21_vm3, %v3211_v22, 0.0 }
 0x19d   :  { %v1576_v44 = vadd.f32 %v1575_v40, %v1574_v35  ;;  %v1773_v45 = vadd.f32 %v1772_v39, %v1771_v38  ;;  %v1678_v35 = vmul.f32 %v3158_v5, %v3158_v5  ;;  %v1792_v38 = vsel %vm21_vm3, %v1676_v28, 0.0 }
 0x19e   :  { %v1601_v5 = vsel %vm21_vm3, %v3191_v56, 0.0 }
 0x19f   :  { %v1578_v60 = vadd.f32 %v1577_v17, %v1576_v44  ;;  %v1775_v4 = vadd.f32 %v1774_v47, %v1773_v45  ;;  %v1794_v44 = vsel %vm21_vm3, %v1677_v26, 0.0  ;;  %v1680_v17 = vmul.f32 %v3191_v56, %v3191_v56 }
 0x1a0   :  { %v1796_v21 = vsel %vm21_vm3, %v1678_v35, 0.0  ;;  %v1605_v56 = vsel %vm21_vm3, %v3225_v36, 0.0 }
 0x1a1   :  { %v1580_v9 = vadd.f32 %v1579_v32, %v1578_v60  ;;  %v1777_v59 = vadd.f32 %v1776_v52, %v1775_v4  ;;  %v1681_v52 = vmul.f32 %v3211_v22, %v3211_v22  ;;  %v1798_v32 = vsel %vm21_vm3, %v1679_v43, 0.0 }
 0x1a2   :  { %v1607_v22 = vsel %vm21_vm3, %v3245_v3, 0.0 }
 0x1a3   :  { %v1582_v15 = vadd.f32 %v1581_v54, %v1580_v9  ;;  %v1779_v30 = vadd.f32 %v1778_v62, %v1777_v59  ;;  %v1682_v59 = vmul.f32 %v3225_v36, %v3225_v36  ;;  %v1800_v62 = vsel %vm21_vm3, %v1680_v17, 0.0 }
 0x1a5   :  { %v1584_v2 = vadd.f32 %v1583_v0, %v1582_v15  ;;  %v1781_v6 = vadd.f32 %v1780_v63, %v1779_v30  ;;  %v1683_v15 = vmul.f32 %v3245_v3, %v3245_v3  ;;  %v1802_v30 = vsel %vm21_vm3, %v1681_v52, 0.0 }
 0x1a6   :  { %v1684_v0 = vmul.f32 %v3258_v23, %v3258_v23 }
 0x1a7   :  { %v1586_v13 = vadd.f32 %v1585_v7, %v1584_v2  ;;  %v1783_v14 = vadd.f32 %v1782_v12, %v1781_v6  ;;  %v1685_v2 = vmul.f32 %v3277_v1, %v3277_v1  ;;  %v1804_v6 = vsel %vm21_vm3, %v1682_v59, 0.0 }
 0x1a8   :  { %v1611_v12 = vsel %vm21_vm3, %v3277_v1, 0.0  ;;  %v1808_v18 = vsel %vm21_vm3, %v1684_v0, 0.0 }
 0x1a9   :  { %v1588_v41 = vadd.f32 %v1587_v16, %v1586_v13  ;;  %v1785_v19 = vadd.f32 %v1784_v48, %v1783_v14  ;;  %v1806_v13 = vsel %vm21_vm3, %v1683_v15, 0.0  ;;  %v1686_v16 = vmul.f32 %v3288_v37, %v3288_v37 }
 0x1aa   :  { %v1810_v48 = vsel %vm21_vm3, %v1685_v2, 0.0 }
 0x1ab   :  { %v1590_v61 = vadd.f32 %v1589_v11, %v1588_v41  ;;  %v1787_v20 = vadd.f32 %v1786_v34, %v1785_v19  ;;  %v1613_v11 = vsel %vm21_vm3, %v3288_v37, 0.0  ;;  %v1812_v1 = vsel %vm21_vm3, %v1686_v16, 0.0 }
 0x1ad   :  { %v1592_v29 = vadd.f32 %v1591_v50, %v1590_v61  ;;  %v1789_v25 = vadd.f32 %v1788_v55, %v1787_v20 }
 0x1af   :  { %v1594_v42 = vadd.f32 %v1593_v51, %v1592_v29  ;;  %v1791_v57 = vadd.f32 %v1790_v33, %v1789_v25 }
 0x1b1   :  { %v1596_v39 = vadd.f32 %v1595_v10, %v1594_v42  ;;  %v1793_v40 = vadd.f32 %v1792_v38, %v1791_v57 }
 0x1b3   :  { %v1598_v45 = vadd.f32 %v1597_v24, %v1596_v39  ;;  %v1795_v47 = vadd.f32 %v1794_v44, %v1793_v40 }
 0x1b5   :  { %v1600_v60 = vadd.f32 %v1599_v53, %v1598_v45  ;;  %v1797_v4 = vadd.f32 %v1796_v21, %v1795_v47 }
 0x1b7   :  { %v1602_v58 = vadd.f32 %v1601_v5, %v1600_v60  ;;  %v1799_v9 = vadd.f32 %v1798_v32, %v1797_v4 }
 0x1b9   :  { %v1604_v54 = vadd.f32 %v1603_v49, %v1602_v58  ;;  %v1801_v46 = vadd.f32 %v1800_v62, %v1799_v9 }
 0x1bb   :  { %v1606_v63 = vadd.f32 %v1605_v56, %v1604_v54  ;;  %v1803_v8 = vadd.f32 %v1802_v30, %v1801_v46 }
 0x1bd   :  { %v1608_v7 = vadd.f32 %v1607_v22, %v1606_v63  ;;  %v1805_v36 = vadd.f32 %v1804_v6, %v1803_v8 }
 0x1bf   :  { %v1610_v14 = vadd.f32 %v1609_v31, %v1608_v7  ;;  %v1807_v3 = vadd.f32 %v1806_v13, %v1805_v36 }
 0x1c1   :  { %v1612_v41 = vadd.f32 %v1611_v12, %v1610_v14  ;;  %v1809_v19 = vadd.f32 %v1808_v18, %v1807_v3 }
 0x1c3   :  { %v1614_v23 = vadd.f32 %v1613_v11, %v1612_v41  ;;  %v1811_v27 = vadd.f32 %v1810_v48, %v1809_v19 }
 0x1c5   :  { %v1615_v34 = vrot.slane %v1614_v23, 4  ;;  %v1813_v61 = vadd.f32 %v1812_v1, %v1811_v27 }
 0x1c7   :  { %v1616_v20 = vadd.f32 %v1615_v34, %v1614_v23  ;;  %v1814_v50 = vrot.slane %v1813_v61, 4 }
 0x1c9   :  { %v1617_v28 = vrot.slane %v1616_v20, 2  ;;  %v1815_v55 = vadd.f32 %v1814_v50, %v1813_v61 }
 0x1cb   :  { %v1618_v29 = vadd.f32 %v1617_v28, %v1616_v20  ;;  %v1816_v25 = vrot.slane %v1815_v55, 2 }
 0x1cd   :  { %v1619_v51 = vrot.slane %v1618_v29, 1  ;;  %v1817_v26 = vadd.f32 %v1816_v25, %v1815_v55 }
 0x1cf   :  { %v1620_v37 = vadd.f32 %v1619_v51, %v1618_v29  ;;  %v1818_v33 = vrot.slane %v1817_v26, 1 }
 0x1d1   :  { %1622 = vst.msk [vmem:[#allocation3] sm:$0x1] %vm1621_vm5, %v1620_v37  ;;  %v1819_v42 = vadd.f32 %v1818_v33, %v1817_v26 }
 0x1d2   :  { %2240 = shalt.err (!%p2237_p4)
}
 0x1d3   :  { %s2241_s23 = scalar_lea.hbm %s3471_s3, 16 }
 0x1d4   :  { %p2242_p5 = scmp.ne.s32.totalorder %s3471_s3, %s2241_s23  ;;  %p2245_p6 = scmp.lt.u32.totalorder %s2241_s23, %s3471_s3 }
 0x1d6   :  { %p2247_p7 = pnand %p2245_p6, %p2242_p5 }
 0x1d8   :  { %2250 = shalt.err (!%p2247_p7)
}
 0x1d9   :  { %1832 = dma.vmem_to_hbm [thread:$0]  %s1830_s16, 16, %s3471_s3, [#allocation4]   ;;  %1820 = vst.msk [vmem:[#allocation5] sm:$0x1] %vm1621_vm5, %v1819_v42 }
 0x1da   :  { %s2251_s29 = scalar_lea.vmem %s3435_s18, 16  ;;  %s2255_s30 = scalar_lea.vmem %s3435_s18, 32 }
 0x1db   :  { %p2252_p8 = scmp.ne.s32.totalorder %s3435_s18, %s2251_s29  ;;  %p2256_p9 = scmp.lt.s32.totalorder %s3435_s18, %s3435_s18 }
 0x1dc   :  { %p2257_p10 = scmp.lt.s32.totalorder %s2255_s30, %s2251_s29 }
 0x1de   :  { %p2258_p11 = por %p2257_p10, %p2256_p9 }
 0x1e0   :  { %p2259_p12 = pnand %p2258_p11, %p2252_p8 }
 0x1e2   :  { %2262 = shalt.err (!%p2259_p12)
}
 0x1e3   :  { %s2263_s7 = scalar_lea.hbm %s3472_s4, 16 }
 0x1e4   :  { %p2264_p13 = scmp.ne.s32.totalorder %s3472_s4, %s2263_s7  ;;  %p2267_p0 = scmp.lt.u32.totalorder %s2263_s7, %s3472_s4 }
 0x1e6   :  { %p2269_p1 = pnand %p2267_p0, %p2264_p13 }
 0x1e8   :  { %2272 = shalt.err (!%p2269_p1)
}
 0x1e9   :  { %1842 = dma.vmem_to_hbm [thread:$0]  %s3435_s18, 16, %s3472_s4, [#allocation6]  }
 0x1ea   :  { %2273 = dma.done.wait [#allocation4], 16  }
 0x1eb   :  { %2274 = vsyncadd [#allocation4], 4294967280 }
 0x1ec   :  { %2275 = dma.done.wait [#allocation6], 16  }
 0x1ed   :  { %2276 = vsyncadd [#allocation6], 4294967280 }
 0x1ee   :  { %1851 = vsyncpa [#allocation4], 1 }
 0x1ef   :  { %1852 = vsyncpa [#allocation6], 1 }

</bundles_post_ra>
